<compile_context>
chip_gen: v5e
topology: v5e:2x2
jax: 0.10.0
libtpu: 0.0.40
codegen_flags: <defaults>
</compile_context>

<pallas_src>
import jax
import jax.numpy as jnp
from jax.experimental import pallas as pl
from jax.experimental.pallas import tpu as pltpu


def _vmem():
    return pl.BlockSpec(memory_space=pltpu.MemorySpace.VMEM)


# ------------------------------ fused kernel --------------------------------

def _make_fused_kernel(n_conv, hidden_sizes, mask_slots, n_actions, batch,
                       eps=1e-5):
    """Entire forward: dense-folded convs + FC towers + LN + dueling heads.

    Operand order:
      x, [Wc_0, bc_0, ..., Wc_{nc-1}, bc_{nc-1}],
         [Wf_0, P_0, ..., Wf_{nh-1}, P_{nh-1}],
         W_head, b_head, [LN masks (one per unique hidden size)]
    Wf_i holds both towers (concat for layer 0, block-diag after),
    P_i = stacked (bias, gamma, beta) of shape (3, 2*h).
    """
    n_hidden = len(hidden_sizes)

    def kernel(*refs):
        o_ref = refs[-1]
        in_refs = refs[:-1]
        idx = 0
        x_ref = in_refs[idx]; idx += 1
        conv_refs = in_refs[idx: idx + 2 * n_conv]; idx += 2 * n_conv
        fc_refs = in_refs[idx: idx + 2 * n_hidden]; idx += 2 * n_hidden
        wh_ref = in_refs[idx]; bh_ref = in_refs[idx + 1]; idx += 2
        mask_refs = in_refs[idx:]

        # ---- conv stage: each conv folded into one dense matmul + ReLU ----
        h = x_ref[...]                                     # (B, Din) f32
        for c in range(n_conv):
            w_ref = conv_refs[2 * c]                       # (Din, Dout) bf16
            b_ref = conv_refs[2 * c + 1]                   # (1, Dout)  f32
            h = jnp.dot(h.astype(jnp.bfloat16), w_ref[...],
                        preferred_element_type=jnp.float32) + b_ref[...]
            h = jnp.maximum(h, 0.0)

        # ---- FC towers + per-tower LayerNorm (carried value = LN output) ----
        cur = h                                            # (B, 2h) f32
        for i, hsz in enumerate(hidden_sizes):
            w_ref = fc_refs[2 * i]                         # (Din_i, 2h) bf16
            p_ref = fc_refs[2 * i + 1]                     # (3, 2h)     f32
            m_ref = mask_refs[mask_slots[i]]               # (2h, 2h)    f32
            pre = jnp.dot(cur.astype(jnp.bfloat16), w_ref[...],
                          preferred_element_type=jnp.float32) + p_ref[0:1, :]
            # Per-tower mean and E[x^2] via one segment-averaging dot (f32).
            stacked = jnp.concatenate([pre, pre * pre], axis=0)   # (2B, 2h)
            stats = jnp.dot(stacked, m_ref[...],
                            preferred_element_type=jnp.float32)
            mu = stats[:batch, :]
            var = stats[batch:, :] - mu * mu
            cur = ((pre - mu) * jax.lax.rsqrt(var + eps)
                   * p_ref[1:2, :] + p_ref[2:3, :])

        act = jnp.maximum(cur, 0.0)                        # ReLU -> head inputs
        scores = jnp.dot(act.astype(jnp.bfloat16), wh_ref[...],
                         preferred_element_type=jnp.float32) + bh_ref[...]
        adv = scores[:, :n_actions]
        state = scores[:, n_actions:n_actions + 1]
        # Dueling combine; mean over ALL advantage elements (torch.mean).
        o_ref[...] = state + adv - jnp.mean(adv)

    return kernel


# ------------------------------- full forward -------------------------------

def dqn_forward(x_nchw, prep):
    B = x_nchw.shape[0]
    # Contiguous NCHW flatten (same order as torch x.view(B, -1)); no transpose.
    x_flat = x_nchw.reshape(B, -1).astype(jnp.float32)

    operands = [x_flat]
    for (w, b) in prep["conv"]:
        operands += [w, b]
    for (w, p) in prep["fc"]:
        operands += [w, p]
    wh, bh, n_actions = prep["head"]
    operands += [wh, bh]
    operands += list(prep["masks"])

    kernel = _make_fused_kernel(len(prep["conv"]),
                                tuple(prep["hidden_sizes"]),
                                tuple(prep["mask_slots"]),
                                n_actions, B)
    return pl.pallas_call(
        kernel,
        out_shape=jax.ShapeDtypeStruct((B, n_actions), jnp.float32),
        in_specs=[_vmem()] * len(operands),
        out_specs=_vmem(),
    )(*operands)


# --------------------------- parameter preparation ---------------------------

def make_params(key, observation_space, conv_params, hidden_params, n_actions):
    """PyTorch-layout parameters (Conv2d (Cout,Cin,k,k), Linear (Dout,Din))."""
    size_x, size_y, size_z = observation_space
    params = {"conv": [], "fc_action_hidden": [], "fc_state_hidden": []}

    def u(k_, shape):
        return jax.random.uniform(k_, shape, jnp.float32, -0.1, 0.1)

    in_ch = size_z
    for (out_ch, k, s, p) in conv_params:
        key, kw, kb = jax.random.split(key, 3)
        params["conv"].append((u(kw, (out_ch, in_ch, k, k)), u(kb, (out_ch,)), s, p))
        size_x = (size_x - k + 2 * p) // s + 1
        size_y = (size_y - k + 2 * p) // s + 1
        in_ch = out_ch

    din = size_x * size_y * conv_params[-1][0]
    for h in hidden_params:
        key, k1, k2, k3, k4 = jax.random.split(key, 5)
        params["fc_action_hidden"].append(
            (u(k1, (h, din)), u(k2, (h,)), jnp.ones((h,), jnp.float32),
             jnp.zeros((h,), jnp.float32)))
        params["fc_state_hidden"].append(
            (u(k3, (h, din)), u(k4, (h,)), jnp.ones((h,), jnp.float32),
             jnp.zeros((h,), jnp.float32)))
        din = h

    key, k1, k2, k3, k4 = jax.random.split(key, 5)
    params["fc_action_head"] = (u(k1, (n_actions, hidden_params[-1])),
                                u(k2, (n_actions,)))
    params["fc_state_head"] = (u(k3, (1, hidden_params[-1])), u(k4, (1,)))
    return params


def _conv_as_dense(w, b, stride, pad, in_shape):
    """Exact dense fold of a Conv2d: run the conv on an identity basis.

    w: (Cout, Cin, k, k) torch layout; in_shape = (Cin, Hin, Win).
    Returns (Wdense (Cin*Hin*Win, Cout*Ho*Wo), bdense (1, Cout*Ho*Wo),
             out_shape (Cout, Ho, Wo)), both flattened in NCHW order.
    Prep-time only (never in the forward path).
    """
    Cin, Hin, Win = in_shape
    din = Cin * Hin * Win
    eye = jnp.eye(din, dtype=jnp.float32).reshape(din, Cin, Hin, Win)
    out = jax.lax.conv_general_dilated(
        eye, w.astype(jnp.float32),
        window_strides=(stride, stride),
        padding=[(pad, pad), (pad, pad)],
        dimension_numbers=("NCHW", "OIHW", "NCHW"))
    cout, ho, wo = out.shape[1], out.shape[2], out.shape[3]
    wdense = out.reshape(din, cout * ho * wo)
    bdense = jnp.repeat(b.astype(jnp.float32), ho * wo).reshape(1, cout * ho * wo)
    return wdense, bdense, (cout, ho, wo)


def prepare_params(params, observation_space):
    """Fold PyTorch-layout params into kernel-ready operands (prep-time only)."""
    size_x, size_y, size_z = observation_space
    prep = {"conv": [], "fc": [], "head": None,
            "masks": [], "mask_slots": [], "hidden_sizes": []}

    # Conv layers -> dense per-sample matrices; fold /255 into layer 0.
    in_shape = (size_z, size_x, size_y)
    for li, (w, b, stride, pad) in enumerate(params["conv"]):
        wd, bd, in_shape = _conv_as_dense(w, b, stride, pad, in_shape)
        if li == 0:
            wd = wd * (1.0 / 255.0)
        prep["conv"].append((wd.astype(jnp.bfloat16), bd.astype(jnp.float32)))

    # FC hidden layers: both towers in one weight per layer.
    for i, ((wa, ba, ga, bga), (ws, bs, gs, bgs)) in enumerate(
            zip(params["fc_action_hidden"], params["fc_state_hidden"])):
        h = wa.shape[0]
        if i == 0:
            # Conv dense output is NCHW-flattened == torch x.view(B,-1) order,
            # so the torch FC-0 weights are used directly (no permutation fold).
            wc = jnp.concatenate([wa.T, ws.T], axis=1)                 # (Din, 2h)
        else:
            hin = wa.shape[1]
            z = jnp.zeros((hin, h), jnp.float32)
            wc = jnp.concatenate(
                [jnp.concatenate([wa.T, z], axis=1),
                 jnp.concatenate([z, ws.T], axis=1)], axis=0)          # (2hin, 2h)
        pc = jnp.stack([jnp.concatenate([ba, bs]),
                        jnp.concatenate([ga, gs]),
                        jnp.concatenate([bga, bgs])]).astype(jnp.float32)  # (3,2h)
        prep["fc"].append((wc.astype(jnp.bfloat16), pc))
        prep["hidden_sizes"].append(int(h))

    # Precomputed per-tower LayerNorm segment-averaging masks (dedup by size).
    unique_h = []
    for h in prep["hidden_sizes"]:
        if h not in unique_h:
            unique_h.append(h)
        prep["mask_slots"].append(unique_h.index(h))
    for h in unique_h:
        two_h = 2 * h
        row = jnp.arange(two_h)[:, None] // h
        col = jnp.arange(two_h)[None, :] // h
        prep["masks"].append(
            jnp.where(row == col, 1.0 / h, 0.0).astype(jnp.float32))

    # Heads: state head appended as an extra output column of the action head.
    wa_h, ba_h = params["fc_action_head"]
    ws_h, bs_h = params["fc_state_head"]
    n_actions, h_last = wa_h.shape
    wh = jnp.zeros((2 * h_last, n_actions + 1), jnp.float32)
    wh = wh.at[:h_last, :n_actions].set(wa_h.T).at[h_last:, n_actions:].set(ws_h.T)
    bh = jnp.concatenate([ba_h, bs_h]).reshape(1, n_actions + 1)
    prep["head"] = (wh.astype(jnp.bfloat16), bh.astype(jnp.float32), int(n_actions))
    return prep


# ----------------------------------- main -----------------------------------

if __name__ == "__main__":
    observation_space = (16, 16, 4)              # (H, W, C)
    conv_params = [(8, 3, 2, 1), (16, 3, 2, 1)]  # (out_ch, kernel, stride, pad)
    hidden_params = [32, 32]
    n_actions = 6
    batch = 2

    key = jax.random.PRNGKey(0)
    key, kx, kp = jax.random.split(key, 3)
    params = make_params(kp, observation_space, conv_params, hidden_params,
                         n_actions)
    prep = prepare_params(params, observation_space)

    # NCHW input with uint8-like pixel values in [0, 255].
    x = jax.random.uniform(kx, (batch, observation_space[2],
                                observation_space[0], observation_space[1]),
                           jnp.float32, 0.0, 255.0)

    forward = jax.jit(lambda inp: dqn_forward(inp, prep))
    out = jax.block_until_ready(forward(x))
    assert out.shape == (batch, n_actions), out.shape
    print("KERNEL_OK")
</pallas_src>

<mosaic_0001>
module attributes {stable_mosaic.version = 11 : i64} {
  func.func @kernel(%arg0: memref<2x1024xf32, #tpu.memory_space<vmem>>, %arg1: memref<1024x512xbf16, #tpu.memory_space<vmem>>, %arg2: memref<1x512xf32, #tpu.memory_space<vmem>>, %arg3: memref<512x256xbf16, #tpu.memory_space<vmem>>, %arg4: memref<1x256xf32, #tpu.memory_space<vmem>>, %arg5: memref<256x64xbf16, #tpu.memory_space<vmem>>, %arg6: memref<3x64xf32, #tpu.memory_space<vmem>>, %arg7: memref<64x64xbf16, #tpu.memory_space<vmem>>, %arg8: memref<3x64xf32, #tpu.memory_space<vmem>>, %arg9: memref<64x7xbf16, #tpu.memory_space<vmem>>, %arg10: memref<1x7xf32, #tpu.memory_space<vmem>>, %arg11: memref<64x64xf32, #tpu.memory_space<vmem>>, %arg12: memref<2x6xf32, #tpu.memory_space<vmem>>) attributes {dimension_semantics = [], scalar_prefetch = 0 : i64, scratch_operands = 0 : i64, tpu.core_type = #tpu.core_type<tc>} {
    %c0 = arith.constant 0 : index
    %c0_0 = arith.constant 0 : index
    %0 = vector.load %arg0[%c0, %c0_0] : memref<2x1024xf32, #tpu.memory_space<vmem>>, vector<2x1024xf32>
    %1 = arith.truncf %0 : vector<2x1024xf32> to vector<2x1024xbf16>
    %c0_1 = arith.constant 0 : index
    %c0_2 = arith.constant 0 : index
    %2 = vector.load %arg1[%c0_1, %c0_2] : memref<1024x512xbf16, #tpu.memory_space<vmem>>, vector<1024x512xbf16>
    %cst = arith.constant dense<0.000000e+00> : vector<2x512xf32>
    %3 = tpu.matmul %1, %2, %cst {dimension_numbers = #tpu.dot_dimension_numbers<[1], [0], [0], [1], [0, 0, 1, 1], [], []>} : vector<2x1024xbf16>, vector<1024x512xbf16>, vector<2x512xf32> -> vector<2x512xf32>
    %c0_3 = arith.constant 0 : index
    %c0_4 = arith.constant 0 : index
    %4 = vector.load %arg2[%c0_3, %c0_4] : memref<1x512xf32, #tpu.memory_space<vmem>>, vector<1x512xf32>
    %5 = vector.broadcast %4 : vector<1x512xf32> to vector<2x512xf32>
    %6 = arith.addf %3, %5 : vector<2x512xf32>
    %cst_5 = arith.constant 0.000000e+00 : f32
    %7 = vector.broadcast %cst_5 : f32 to vector<2x512xf32>
    %8 = arith.maximumf %6, %7 : vector<2x512xf32>
    %9 = arith.truncf %8 : vector<2x512xf32> to vector<2x512xbf16>
    %c0_6 = arith.constant 0 : index
    %c0_7 = arith.constant 0 : index
    %10 = vector.load %arg3[%c0_6, %c0_7] : memref<512x256xbf16, #tpu.memory_space<vmem>>, vector<512x256xbf16>
    %cst_8 = arith.constant dense<0.000000e+00> : vector<2x256xf32>
    %11 = tpu.matmul %9, %10, %cst_8 {dimension_numbers = #tpu.dot_dimension_numbers<[1], [0], [0], [1], [0, 0, 1, 1], [], []>} : vector<2x512xbf16>, vector<512x256xbf16>, vector<2x256xf32> -> vector<2x256xf32>
    %c0_9 = arith.constant 0 : index
    %c0_10 = arith.constant 0 : index
    %12 = vector.load %arg4[%c0_9, %c0_10] : memref<1x256xf32, #tpu.memory_space<vmem>>, vector<1x256xf32>
    %13 = vector.broadcast %12 : vector<1x256xf32> to vector<2x256xf32>
    %14 = arith.addf %11, %13 : vector<2x256xf32>
    %cst_11 = arith.constant 0.000000e+00 : f32
    %15 = vector.broadcast %cst_11 : f32 to vector<2x256xf32>
    %16 = arith.maximumf %14, %15 : vector<2x256xf32>
    %17 = arith.truncf %16 : vector<2x256xf32> to vector<2x256xbf16>
    %c0_12 = arith.constant 0 : index
    %c0_13 = arith.constant 0 : index
    %18 = vector.load %arg5[%c0_12, %c0_13] : memref<256x64xbf16, #tpu.memory_space<vmem>>, vector<256x64xbf16>
    %cst_14 = arith.constant dense<0.000000e+00> : vector<2x64xf32>
    %19 = tpu.matmul %17, %18, %cst_14 {dimension_numbers = #tpu.dot_dimension_numbers<[1], [0], [0], [1], [0, 0, 1, 1], [], []>} : vector<2x256xbf16>, vector<256x64xbf16>, vector<2x64xf32> -> vector<2x64xf32>
    %c0_15 = arith.constant 0 : index
    %c0_16 = arith.constant 0 : index
    %20 = vector.load %arg6[%c0_15, %c0_16] : memref<3x64xf32, #tpu.memory_space<vmem>>, vector<1x64xf32>
    %21 = vector.broadcast %20 : vector<1x64xf32> to vector<2x64xf32>
    %22 = arith.addf %19, %21 : vector<2x64xf32>
    %23 = arith.mulf %22, %22 : vector<2x64xf32>
    %24 = tpu.concatenate %22, %23 in 0 : vector<2x64xf32>, vector<2x64xf32> -> vector<4x64xf32>
    %c0_17 = arith.constant 0 : index
    %c0_18 = arith.constant 0 : index
    %25 = vector.load %arg11[%c0_17, %c0_18] : memref<64x64xf32, #tpu.memory_space<vmem>>, vector<64x64xf32>
    %cst_19 = arith.constant dense<0.000000e+00> : vector<4x64xf32>
    %26 = tpu.matmul %24, %25, %cst_19 {dimension_numbers = #tpu.dot_dimension_numbers<[1], [0], [0], [1], [0, 0, 1, 1], [], []>} : vector<4x64xf32>, vector<64x64xf32>, vector<4x64xf32> -> vector<4x64xf32>
    %27 = vector.extract_strided_slice %26 {offsets = [0, 0], sizes = [2, 64], strides = [1, 1]} : vector<4x64xf32> to vector<2x64xf32>
    %28 = vector.extract_strided_slice %26 {offsets = [2, 0], sizes = [2, 64], strides = [1, 1]} : vector<4x64xf32> to vector<2x64xf32>
    %29 = arith.mulf %27, %27 : vector<2x64xf32>
    %30 = arith.subf %28, %29 : vector<2x64xf32>
    %31 = arith.subf %22, %27 : vector<2x64xf32>
    %cst_20 = arith.constant 9.99999974E-6 : f32
    %32 = vector.broadcast %cst_20 : f32 to vector<2x64xf32>
    %33 = arith.addf %30, %32 : vector<2x64xf32>
    %34 = math.rsqrt %33 : vector<2x64xf32>
    %35 = arith.mulf %31, %34 : vector<2x64xf32>
    %c1 = arith.constant 1 : index
    %c0_21 = arith.constant 0 : index
    %36 = vector.load %arg6[%c1, %c0_21] : memref<3x64xf32, #tpu.memory_space<vmem>>, vector<1x64xf32>
    %37 = vector.broadcast %36 : vector<1x64xf32> to vector<2x64xf32>
    %38 = arith.mulf %35, %37 : vector<2x64xf32>
    %c2 = arith.constant 2 : index
    %c0_22 = arith.constant 0 : index
    %39 = vector.load %arg6[%c2, %c0_22] : memref<3x64xf32, #tpu.memory_space<vmem>>, vector<1x64xf32>
    %40 = vector.broadcast %39 : vector<1x64xf32> to vector<2x64xf32>
    %41 = arith.addf %38, %40 : vector<2x64xf32>
    %42 = arith.truncf %41 : vector<2x64xf32> to vector<2x64xbf16>
    %c0_23 = arith.constant 0 : index
    %c0_24 = arith.constant 0 : index
    %43 = vector.load %arg7[%c0_23, %c0_24] : memref<64x64xbf16, #tpu.memory_space<vmem>>, vector<64x64xbf16>
    %cst_25 = arith.constant dense<0.000000e+00> : vector<2x64xf32>
    %44 = tpu.matmul %42, %43, %cst_25 {dimension_numbers = #tpu.dot_dimension_numbers<[1], [0], [0], [1], [0, 0, 1, 1], [], []>} : vector<2x64xbf16>, vector<64x64xbf16>, vector<2x64xf32> -> vector<2x64xf32>
    %c0_26 = arith.constant 0 : index
    %c0_27 = arith.constant 0 : index
    %45 = vector.load %arg8[%c0_26, %c0_27] : memref<3x64xf32, #tpu.memory_space<vmem>>, vector<1x64xf32>
    %46 = vector.broadcast %45 : vector<1x64xf32> to vector<2x64xf32>
    %47 = arith.addf %44, %46 : vector<2x64xf32>
    %48 = arith.mulf %47, %47 : vector<2x64xf32>
    %49 = tpu.concatenate %47, %48 in 0 : vector<2x64xf32>, vector<2x64xf32> -> vector<4x64xf32>
    %c0_28 = arith.constant 0 : index
    %c0_29 = arith.constant 0 : index
    %50 = vector.load %arg11[%c0_28, %c0_29] : memref<64x64xf32, #tpu.memory_space<vmem>>, vector<64x64xf32>
    %cst_30 = arith.constant dense<0.000000e+00> : vector<4x64xf32>
    %51 = tpu.matmul %49, %50, %cst_30 {dimension_numbers = #tpu.dot_dimension_numbers<[1], [0], [0], [1], [0, 0, 1, 1], [], []>} : vector<4x64xf32>, vector<64x64xf32>, vector<4x64xf32> -> vector<4x64xf32>
    %52 = vector.extract_strided_slice %51 {offsets = [0, 0], sizes = [2, 64], strides = [1, 1]} : vector<4x64xf32> to vector<2x64xf32>
    %53 = vector.extract_strided_slice %51 {offsets = [2, 0], sizes = [2, 64], strides = [1, 1]} : vector<4x64xf32> to vector<2x64xf32>
    %54 = arith.mulf %52, %52 : vector<2x64xf32>
    %55 = arith.subf %53, %54 : vector<2x64xf32>
    %56 = arith.subf %47, %52 : vector<2x64xf32>
    %cst_31 = arith.constant 9.99999974E-6 : f32
    %57 = vector.broadcast %cst_31 : f32 to vector<2x64xf32>
    %58 = arith.addf %55, %57 : vector<2x64xf32>
    %59 = math.rsqrt %58 : vector<2x64xf32>
    %60 = arith.mulf %56, %59 : vector<2x64xf32>
    %c1_32 = arith.constant 1 : index
    %c0_33 = arith.constant 0 : index
    %61 = vector.load %arg8[%c1_32, %c0_33] : memref<3x64xf32, #tpu.memory_space<vmem>>, vector<1x64xf32>
    %62 = vector.broadcast %61 : vector<1x64xf32> to vector<2x64xf32>
    %63 = arith.mulf %60, %62 : vector<2x64xf32>
    %c2_34 = arith.constant 2 : index
    %c0_35 = arith.constant 0 : index
    %64 = vector.load %arg8[%c2_34, %c0_35] : memref<3x64xf32, #tpu.memory_space<vmem>>, vector<1x64xf32>
    %65 = vector.broadcast %64 : vector<1x64xf32> to vector<2x64xf32>
    %66 = arith.addf %63, %65 : vector<2x64xf32>
    %cst_36 = arith.constant 0.000000e+00 : f32
    %67 = vector.broadcast %cst_36 : f32 to vector<2x64xf32>
    %68 = arith.maximumf %66, %67 : vector<2x64xf32>
    %69 = arith.truncf %68 : vector<2x64xf32> to vector<2x64xbf16>
    %c0_37 = arith.constant 0 : index
    %c0_38 = arith.constant 0 : index
    %70 = vector.load %arg9[%c0_37, %c0_38] : memref<64x7xbf16, #tpu.memory_space<vmem>>, vector<64x7xbf16>
    %cst_39 = arith.constant dense<0.000000e+00> : vector<2x7xf32>
    %71 = tpu.matmul %69, %70, %cst_39 {dimension_numbers = #tpu.dot_dimension_numbers<[1], [0], [0], [1], [0, 0, 1, 1], [], []>} : vector<2x64xbf16>, vector<64x7xbf16>, vector<2x7xf32> -> vector<2x7xf32>
    %c0_40 = arith.constant 0 : index
    %c0_41 = arith.constant 0 : index
    %72 = vector.load %arg10[%c0_40, %c0_41] : memref<1x7xf32, #tpu.memory_space<vmem>>, vector<1x7xf32>
    %73 = vector.broadcast %72 : vector<1x7xf32> to vector<2x7xf32>
    %74 = arith.addf %71, %73 : vector<2x7xf32>
    %75 = vector.extract_strided_slice %74 {offsets = [0, 0], sizes = [2, 6], strides = [1, 1]} : vector<2x7xf32> to vector<2x6xf32>
    %76 = vector.extract_strided_slice %74 {offsets = [0, 6], sizes = [2, 1], strides = [1, 1]} : vector<2x7xf32> to vector<2x1xf32>
    %77 = vector.broadcast %76 : vector<2x1xf32> to vector<2x6xf32>
    %78 = arith.addf %77, %75 : vector<2x6xf32>
    %79 = vector.shape_cast %75 : vector<2x6xf32> to vector<1x2x6xf32>
    %cst_42 = arith.constant dense<0.000000e+00> : vector<1xf32>
    %80 = vector.multi_reduction <add>, %79, %cst_42 [1, 2] : vector<1x2x6xf32> to vector<1xf32>
    %81 = vector.shape_cast %80 : vector<1xf32> to vector<1x1x1xf32>
    %82 = vector.extract %81[0, 0, 0] : f32 from vector<1x1x1xf32>
    %cst_43 = arith.constant 1.200000e+01 : f32
    %83 = arith.divf %82, %cst_43 : f32
    %84 = vector.broadcast %83 : f32 to vector<2x6xf32>
    %85 = arith.subf %78, %84 : vector<2x6xf32>
    %c0_44 = arith.constant 0 : index
    %c0_45 = arith.constant 0 : index
    %86 = vector.load %arg12[%c0_44, %c0_45] : memref<2x6xf32, #tpu.memory_space<vmem>>, vector<2x6xf32>
    tpu.vector_store %arg12[%c0_44, %c0_45], %85 {strides = array<i32>} : memref<2x6xf32, #tpu.memory_space<vmem>>, vector<2x6xf32>,
    return
  }
}

</mosaic_0001>

<bundles_post_ra>
// kernel: _lambda_.1
= control target key start
LH: loop header
LB: loop body
LE: loop exit
PB: predicated region body
PF: predicated region fallthrough
CT: control target
= control target key end

     0   :  { %17 = vsyncpa [#allocation3], 0  ;;  %s5235_s0 = inlined_call_operand.vmem [shape: f32[2,1024], index: 0, kind: input, shape index: {}]   ;;  %s5236_s1 = inlined_call_operand.hbm [shape: bf16[1024,512], index: 1, kind: input, shape index: {}]   ;;  %s5237_s2 = inlined_call_operand.vmem [shape: f32[1,512], index: 2, kind: input, shape index: {}]   ;;  %s5238_s3 = inlined_call_operand.hbm [shape: bf16[512,256], index: 3, kind: input, shape index: {}]   ;;  %s5239_s4 = inlined_call_operand.vmem [shape: f32[1,256], index: 4, kind: input, shape index: {}]   ;;  %s5240_s5 = inlined_call_operand.vmem [shape: bf16[256,64], index: 5, kind: input, shape index: {}]   ;;  %s5241_s6 = inlined_call_operand.vmem [shape: f32[3,64], index: 6, kind: input, shape index: {}]   ;;  %s5242_s7 = inlined_call_operand.hbm [shape: bf16[64,64], index: 7, kind: input, shape index: {}]   ;;  %s5243_s8 = inlined_call_operand.vmem [shape: f32[3,64], index: 8, kind: input, shape index: {}]   ;;  %s5244_s9 = inlined_call_operand.hbm [shape: bf16[64,7], index: 9, kind: input, shape index: {}]   ;;  %s5245_s10 = inlined_call_operand.vmem [shape: f32[1,7], index: 10, kind: input, shape index: {}]   ;;  %s5246_s11 = inlined_call_operand.hbm [shape: f32[64,64], index: 11, kind: input, shape index: {}]   ;;  %s5247_s12 = inlined_call_operand.hbm [shape: f32[2,6], index: 12, kind: output, shape index: {}]  }
   0x1   :  { %18 = vsyncpa [#allocation6], 0 }
   0x2   :  { %19 = vsyncpa [#allocation9], 0  ;;  %s42_s23 = sshll.u32 %s5238_s3, 4  ;;  %s43_s23 = int_to_ptr.hbm [resolvable:$true] %s42_s23 }
   0x3   :  { %20 = vsyncpa [#allocation4], 0  ;;  %s4958_s24 = smov [#allocation5]   ;;  %s4959_s26 = smov 128  }
   0x4   :  { %s44_s25 = sshll.u32 %s4958_s24, 4  ;;  %s4960_s27 = smov 8   ;;  %s45_s25 = int_to_ptr.vmem [resolvable:$true] %s44_s25 }
   0x5   :  { %50 = dma.hbm_to_vmem [thread:$0]  %s43_s23, 8192, %s45_s25, [#allocation6], %s4959_s26, %s4959_s26, %s4960_s27  }
   0x6   :  { %s76_s30 = sshll.u32 %s5244_s9, 4  ;;  %s4961_s13 = smov [#allocation8]   ;;  %s77_s30 = int_to_ptr.hbm [resolvable:$true] %s76_s30 }
   0x7   :  { %s78_s14 = sshll.u32 %s4961_s13, 4  ;;  %s27_s16 = sshll.u32 %s5236_s1, 4  ;;  %s79_s14 = int_to_ptr.vmem [resolvable:$true] %s78_s14  ;;  %s28_s16 = int_to_ptr.hbm [resolvable:$true] %s27_s16 }
   0x8   :  { %s4962_s17 = smov 64   ;;  %s4963_s18 = smov 4  }
   0x9   :  { %84 = dma.hbm_to_vmem [thread:$0]  %s77_s30, 512, %s79_s14, [#allocation9], %s4962_s17, %s4962_s17, %s4963_s18  }
   0xa   :  { %s4964_s19 = smov [#allocation2]   ;;  %s61_s23 = sshll.u32 %s5242_s7, 4  ;;  %s62_s23 = int_to_ptr.hbm [resolvable:$true] %s61_s23 }
   0xb   :  { %s29_s20 = sshll.u32 %s4964_s19, 4  ;;  %s4965_s9 = smov 256   ;;  %s30_s20 = int_to_ptr.vmem [resolvable:$true] %s29_s20 }
   0xc   :  { %s4966_s24 = smov 16   ;;  %s4967_s25 = smov [#allocation7]  }
   0xd   :  { %35 = dma.hbm_to_vmem [thread:$0]  %s28_s16, 32768, %s30_s20, [#allocation3], %s4965_s9, %s4965_s9, %s4966_s24  }
   0xe   :  { %s63_s28 = sshll.u32 %s4967_s25, 4  ;;  %s91_s13 = sshll.u32 %s5246_s11, 4  ;;  %s64_s28 = int_to_ptr.vmem [resolvable:$true] %s63_s28  ;;  %s92_s13 = int_to_ptr.hbm [resolvable:$true] %s91_s13 }
   0xf   :  { %69 = dma.hbm_to_vmem [thread:$0]  %s62_s23, 512, %s64_s28, [#allocation6], %s4962_s17, %s4962_s17, %s4963_s18  }
  0x10   :  { %s4968_s30 = smov [#allocation10]  }
  0x11   :  { %s93_s14 = sshll.u32 %s4968_s30, 4  ;;  %s94_s14 = int_to_ptr.vmem [resolvable:$true] %s93_s14 }
  0x12   :  { %99 = dma.hbm_to_vmem [thread:$0]  %s92_s13, 1024, %s94_s14, [#allocation9], %s4959_s26, %s4959_s26, %s4960_s27  }
  0x13   :  { %4950 = dma.done.wait [#allocation3], 32768  }
  0x14   :  { %4951 = vsyncadd [#allocation3], 4294934528 }
  0x15   :  { %4952 = dma.done.wait [#allocation6], 8704  }
  0x16   :  { %4953 = vsyncadd [#allocation6], 4294958592 }
  0x17   :  { %4954 = dma.done.wait [#allocation9], 1536  }
  0x18   :  { %4955 = vsyncadd [#allocation9], 4294965760  ;;  %v3163_v0 = vld [vmem:[#allocation2 + $0xe0] sm:$0xf]  ;;  %v4459_v1 = vld [vmem:[#allocation2 + $0xec] sm:$0xf0] }
  0x19   :  { %v3291_v2 = vld [vmem:[#allocation2 + $0x1e0] sm:$0xf]  ;;  %v3164_v3 = vor.u32 %v4459_v1, %v3163_v0  ;;  %v4491_v4 = vld [vmem:[#allocation2 + $0x1ec] sm:$0xf0]  ;;  %vm2780_vm0 = vcmask 1041408   ;;  %vm2790_vm1 = vcmask 523264  }
  0x1a   :  { %v3419_v5 = vld [vmem:[#allocation2 + $0x2e0] sm:$0xf]  ;;  %v4523_v6 = vld [vmem:[#allocation2 + $0x2ec] sm:$0xf0]  ;;  %v3292_v7 = vor.u32 %v4491_v4, %v3291_v2  ;;  %vm3007_vm8 = vcmask 41984   ;;  %s4971_s26 = smov [#allocation11]  }
  0x1b   :  { %v3420_v8 = vor.u32 %v4523_v6, %v3419_v5  ;;  %v3547_v9 = vld [vmem:[#allocation2 + $0x3e0] sm:$0xf]  ;;  %v4555_v10 = vld [vmem:[#allocation2 + $0x3ec] sm:$0xf0]  ;;  %1698 = vmatpush.bf16.msra.mxu0 %v3164_v3  ;;  %s3035_s27 = sshll.u32 %s4971_s26, 4  ;;  %s3037_s16 = sshll.u32 %s5247_s12, 4  ;;  %s3036_s27 = int_to_ptr.vmem [resolvable:$true] %s3035_s27  ;;  %s3038_s16 = int_to_ptr.hbm [resolvable:$true] %s3037_s16 }
  0x1c   :  { %v3147_v11 = vld [vmem:[#allocation2 + $0xc0] sm:$0xf]  ;;  %v3548_v12 = vor.u32 %v4555_v10, %v3547_v9  ;;  %v4455_v13 = vld [vmem:[#allocation2 + $0xcc] sm:$0xf0]  ;;  %1711 = vmatpush.bf16.msra.mxu1 %v3292_v7 }
  0x1d   :  { %v3275_v14 = vld [vmem:[#allocation2 + $0x1c0] sm:$0xf]  ;;  %v4487_v15 = vld [vmem:[#allocation2 + $0x1cc] sm:$0xf0]  ;;  %1724 = vmatpush.bf16.msra.mxu2 %v3420_v8  ;;  %v3148_v16 = vor.u32 %v4455_v13, %v3147_v11 }
  0x1e   :  { %v3276_v17 = vor.u32 %v4487_v15, %v3275_v14  ;;  %v3403_v18 = vld [vmem:[#allocation2 + $0x2c0] sm:$0xf]  ;;  %v4519_v19 = vld [vmem:[#allocation2 + $0x2cc] sm:$0xf0]  ;;  %1737 = vmatpush.bf16.msra.mxu3 %v3548_v12 }
  0x1f   :  { %v3531_v20 = vld [vmem:[#allocation2 + $0x3c0] sm:$0xf]  ;;  %v3404_v21 = vor.u32 %v4519_v19, %v3403_v18  ;;  %v4551_v22 = vld [vmem:[#allocation2 + $0x3cc] sm:$0xf0]  ;;  %1699 = vmatpush.bf16.msra.mxu0 %v3148_v16 }
  0x20   :  { %v3131_v23 = vld [vmem:[#allocation2 + $0xa0] sm:$0xf]  ;;  %v4451_v24 = vld [vmem:[#allocation2 + $0xac] sm:$0xf0]  ;;  %v3532_v25 = vor.u32 %v4551_v22, %v3531_v20  ;;  %1712 = vmatpush.bf16.msra.mxu1 %v3276_v17 }
  0x21   :  { %v3259_v26 = vld [vmem:[#allocation2 + $0x1a0] sm:$0xf]  ;;  %v4483_v27 = vld [vmem:[#allocation2 + $0x1ac] sm:$0xf0]  ;;  %v3132_v29 = vor.u32 %v4451_v24, %v3131_v23  ;;  %1725 = vmatpush.bf16.msra.mxu2 %v3404_v21 }
  0x22   :  { %v3387_v28 = vld [vmem:[#allocation2 + $0x2a0] sm:$0xf]  ;;  %v4515_v30 = vld [vmem:[#allocation2 + $0x2ac] sm:$0xf0]  ;;  %v3260_v33 = vor.u32 %v4483_v27, %v3259_v26  ;;  %1738 = vmatpush.bf16.msra.mxu3 %v3532_v25 }
  0x23   :  { %v3515_v31 = vld [vmem:[#allocation2 + $0x3a0] sm:$0xf]  ;;  %v4547_v32 = vld [vmem:[#allocation2 + $0x3ac] sm:$0xf0]  ;;  %v3388_v34 = vor.u32 %v4515_v30, %v3387_v28  ;;  %1700 = vmatpush.bf16.msra.mxu0 %v3132_v29 }
  0x24   :  { %v3115_v35 = vld [vmem:[#allocation2 + $0x80] sm:$0xf]  ;;  %v4447_v36 = vld [vmem:[#allocation2 + $0x8c] sm:$0xf0]  ;;  %v3516_v38 = vor.u32 %v4547_v32, %v3515_v31  ;;  %1713 = vmatpush.bf16.msra.mxu1 %v3260_v33 }
  0x25   :  { %v3243_v37 = vld [vmem:[#allocation2 + $0x180] sm:$0xf]  ;;  %v4479_v39 = vld [vmem:[#allocation2 + $0x18c] sm:$0xf0]  ;;  %v3116_v44 = vor.u32 %v4447_v36, %v3115_v35  ;;  %1726 = vmatpush.bf16.msra.mxu2 %v3388_v34 }
  0x26   :  { %v3371_v40 = vld [vmem:[#allocation2 + $0x280] sm:$0xf]  ;;  %v4511_v41 = vld [vmem:[#allocation2 + $0x28c] sm:$0xf0]  ;;  %v3244_v45 = vor.u32 %v4479_v39, %v3243_v37  ;;  %1739 = vmatpush.bf16.msra.mxu3 %v3516_v38 }
  0x27   :  { %v3499_v42 = vld [vmem:[#allocation2 + $0x380] sm:$0xf]  ;;  %v4543_v43 = vld [vmem:[#allocation2 + $0x38c] sm:$0xf0]  ;;  %v3372_v46 = vor.u32 %v4511_v41, %v3371_v40  ;;  %1701 = vmatpush.bf16.msra.mxu0 %v3116_v44 }
  0x28   :  { %v3099_v47 = vld [vmem:[#allocation2 + $0x60] sm:$0xf]  ;;  %v4443_v48 = vld [vmem:[#allocation2 + $0x6c] sm:$0xf0]  ;;  %v3500_v50 = vor.u32 %v4543_v43, %v3499_v42  ;;  %1714 = vmatpush.bf16.msra.mxu1 %v3244_v45 }
  0x29   :  { %v3227_v49 = vld [vmem:[#allocation2 + $0x160] sm:$0xf]  ;;  %v4475_v51 = vld [vmem:[#allocation2 + $0x16c] sm:$0xf0]  ;;  %v3100_v56 = vor.u32 %v4443_v48, %v3099_v47  ;;  %1727 = vmatpush.bf16.msra.mxu2 %v3372_v46 }
  0x2a   :  { %v3355_v52 = vld [vmem:[#allocation2 + $0x260] sm:$0xf]  ;;  %v4507_v53 = vld [vmem:[#allocation2 + $0x26c] sm:$0xf0]  ;;  %v3228_v57 = vor.u32 %v4475_v51, %v3227_v49  ;;  %1740 = vmatpush.bf16.msra.mxu3 %v3500_v50 }
  0x2b   :  { %v3483_v54 = vld [vmem:[#allocation2 + $0x360] sm:$0xf]  ;;  %v4539_v55 = vld [vmem:[#allocation2 + $0x36c] sm:$0xf0]  ;;  %v3356_v58 = vor.u32 %v4507_v53, %v3355_v52  ;;  %1702 = vmatpush.bf16.msra.mxu0 %v3100_v56 }
  0x2c   :  { %v3083_v59 = vld [vmem:[#allocation2 + $0x40] sm:$0xf]  ;;  %v4439_v60 = vld [vmem:[#allocation2 + $0x4c] sm:$0xf0]  ;;  %v3484_v62 = vor.u32 %v4539_v55, %v3483_v54  ;;  %1715 = vmatpush.bf16.msra.mxu1 %v3228_v57 }
  0x2d   :  { %v3211_v61 = vld [vmem:[#allocation2 + $0x140] sm:$0xf]  ;;  %v4471_v63 = vld [vmem:[#allocation2 + $0x14c] sm:$0xf0]  ;;  %v3084_v4 = vor.u32 %v4439_v60, %v3083_v59  ;;  %1728 = vmatpush.bf16.msra.mxu2 %v3356_v58 }
  0x2e   :  { %v3339_v0 = vld [vmem:[#allocation2 + $0x240] sm:$0xf]  ;;  %v4503_v1 = vld [vmem:[#allocation2 + $0x24c] sm:$0xf0]  ;;  %v3212_v5 = vor.u32 %v4471_v63, %v3211_v61  ;;  %1741 = vmatpush.bf16.msra.mxu3 %v3484_v62 }
  0x2f   :  { %v3467_v2 = vld [vmem:[#allocation2 + $0x340] sm:$0xf]  ;;  %v4535_v3 = vld [vmem:[#allocation2 + $0x34c] sm:$0xf0]  ;;  %v3340_v6 = vor.u32 %v4503_v1, %v3339_v0  ;;  %1703 = vmatpush.bf16.msra.mxu0 %v3084_v4 }
  0x30   :  { %v3067_v7 = vld [vmem:[#allocation2 + $0x20] sm:$0xf]  ;;  %v4435_v8 = vld [vmem:[#allocation2 + $0x2c] sm:$0xf0]  ;;  %v3468_v10 = vor.u32 %v4535_v3, %v3467_v2  ;;  %1716 = vmatpush.bf16.msra.mxu1 %v3212_v5  ;;  %v121_v2 = vld [vmem:[%s5235_s0] sm:$0xff] }
  0x31   :  { %v3195_v9 = vld [vmem:[#allocation2 + $0x120] sm:$0xf]  ;;  %v4467_v11 = vld [vmem:[#allocation2 + $0x12c] sm:$0xf0]  ;;  %v3068_v16 = vor.u32 %v4435_v8, %v3067_v7  ;;  %1729 = vmatpush.bf16.msra.mxu2 %v3340_v6  ;;  %125 = vst [vmem:[#allocation1] ss:$4 sm:$0xff] %v121_v2 }
  0x32   :  { %v3323_v12 = vld [vmem:[#allocation2 + $0x220] sm:$0xf]  ;;  %v4499_v13 = vld [vmem:[#allocation2 + $0x22c] sm:$0xf0]  ;;  %v3196_v19 = vor.u32 %v4467_v11, %v3195_v9  ;;  %1742 = vmatpush.bf16.msra.mxu3 %v3468_v10 }
  0x33   :  { %v3451_v14 = vld [vmem:[#allocation2 + $0x320] sm:$0xf]  ;;  %v4531_v15 = vld [vmem:[#allocation2 + $0x32c] sm:$0xf0]  ;;  %v3324_v20 = vor.u32 %v4499_v13, %v3323_v12  ;;  %1704 = vmatpush.bf16.msra.mxu0 %v3068_v16 }
  0x34   :  { %v3051_v17 = vld [vmem:[#allocation2] sm:$0xf]  ;;  %v4431_v18 = vld [vmem:[#allocation2 + $0xc] sm:$0xf0]  ;;  %v3452_v24 = vor.u32 %v4531_v15, %v3451_v14  ;;  %1717 = vmatpush.bf16.msra.mxu1 %v3196_v19 }
  0x35   :  { %v3179_v21 = vld [vmem:[#allocation2 + $0x100] sm:$0xf]  ;;  %v4463_v22 = vld [vmem:[#allocation2 + $0x10c] sm:$0xf0]  ;;  %v3052_v31 = vor.u32 %v4431_v18, %v3051_v17  ;;  %1730 = vmatpush.bf16.msra.mxu2 %v3324_v20 }
  0x36   :  { %v3307_v23 = vld [vmem:[#allocation2 + $0x200] sm:$0xf]  ;;  %v4495_v25 = vld [vmem:[#allocation2 + $0x20c] sm:$0xf0]  ;;  %v3180_v35 = vor.u32 %v4463_v22, %v3179_v21  ;;  %1743 = vmatpush.bf16.msra.mxu3 %v3452_v24 }
  0x37   :  { %v3435_v26 = vld [vmem:[#allocation2 + $0x300] sm:$0xf]  ;;  %v4527_v27 = vld [vmem:[#allocation2 + $0x30c] sm:$0xf0]  ;;  %v3308_v36 = vor.u32 %v4495_v25, %v3307_v23  ;;  %1705 = vmatpush.bf16.msra.mxu0 %v3052_v31 }
  0x38   :  { %v3675_v28 = vld [vmem:[#allocation2 + $0x4e0] sm:$0xf]  ;;  %v4587_v29 = vld [vmem:[#allocation2 + $0x4ec] sm:$0xf0]  ;;  %v3436_v39 = vor.u32 %v4527_v27, %v3435_v26  ;;  %1718 = vmatpush.bf16.msra.mxu1 %v3180_v35 }
  0x39   :  { %v3803_v30 = vld [vmem:[#allocation2 + $0x5e0] sm:$0xf]  ;;  %v4619_v32 = vld [vmem:[#allocation2 + $0x5ec] sm:$0xf0]  ;;  %v3676_v40 = vor.u32 %v4587_v29, %v3675_v28  ;;  %1731 = vmatpush.bf16.msra.mxu2 %v3308_v36 }
  0x3a   :  { %v3931_v33 = vld [vmem:[#allocation2 + $0x6e0] sm:$0xf]  ;;  %v4651_v34 = vld [vmem:[#allocation2 + $0x6ec] sm:$0xf0]  ;;  %v3804_v41 = vor.u32 %v4619_v32, %v3803_v30  ;;  %1744 = vmatpush.bf16.msra.mxu3 %v3436_v39 }
  0x3b   :  { %v4059_v37 = vld [vmem:[#allocation2 + $0x7e0] sm:$0xf]  ;;  %v4683_v38 = vld [vmem:[#allocation2 + $0x7ec] sm:$0xf0]  ;;  %v3932_v42 = vor.u32 %v4651_v34, %v3931_v33  ;;  %1750 = vmatpush.bf16.msrb.mxu0 %v3676_v40 }
  0x3c   :  { %v3659_v43 = vld [vmem:[#allocation2 + $0x4c0] sm:$0xf]  ;;  %v4583_v44 = vld [vmem:[#allocation2 + $0x4cc] sm:$0xf0]  ;;  %v4060_v46 = vor.u32 %v4683_v38, %v4059_v37  ;;  %1763 = vmatpush.bf16.msrb.mxu1 %v3804_v41 }
  0x3d   :  { %v3787_v45 = vld [vmem:[#allocation2 + $0x5c0] sm:$0xf]  ;;  %v4615_v47 = vld [vmem:[#allocation2 + $0x5cc] sm:$0xf0]  ;;  %v3660_v52 = vor.u32 %v4583_v44, %v3659_v43  ;;  %1776 = vmatpush.bf16.msrb.mxu2 %v3932_v42 }
  0x3e   :  { %v3915_v48 = vld [vmem:[#allocation2 + $0x6c0] sm:$0xf]  ;;  %v4647_v49 = vld [vmem:[#allocation2 + $0x6cc] sm:$0xf0]  ;;  %v3788_v53 = vor.u32 %v4615_v47, %v3787_v45  ;;  %1789 = vmatpush.bf16.msrb.mxu3 %v4060_v46 }
  0x3f   :  { %v4043_v50 = vld [vmem:[#allocation2 + $0x7c0] sm:$0xf]  ;;  %v4679_v51 = vld [vmem:[#allocation2 + $0x7cc] sm:$0xf0]  ;;  %v3916_v54 = vor.u32 %v4647_v49, %v3915_v48  ;;  %1751 = vmatpush.bf16.msrb.mxu0 %v3660_v52 }
  0x40   :  { %v3643_v55 = vld [vmem:[#allocation2 + $0x4a0] sm:$0xf]  ;;  %v4579_v56 = vld [vmem:[#allocation2 + $0x4ac] sm:$0xf0]  ;;  %v4044_v58 = vor.u32 %v4679_v51, %v4043_v50  ;;  %1764 = vmatpush.bf16.msrb.mxu1 %v3788_v53 }
  0x41   :  { %v3771_v57 = vld [vmem:[#allocation2 + $0x5a0] sm:$0xf]  ;;  %v4611_v59 = vld [vmem:[#allocation2 + $0x5ac] sm:$0xf0]  ;;  %v3644_v0 = vor.u32 %v4579_v56, %v3643_v55  ;;  %1777 = vmatpush.bf16.msrb.mxu2 %v3916_v54 }
  0x42   :  { %v3899_v60 = vld [vmem:[#allocation2 + $0x6a0] sm:$0xf]  ;;  %v4643_v61 = vld [vmem:[#allocation2 + $0x6ac] sm:$0xf0]  ;;  %v3772_v3 = vor.u32 %v4611_v59, %v3771_v57  ;;  %1790 = vmatpush.bf16.msrb.mxu3 %v4044_v58 }
  0x43   :  { %v4027_v62 = vld [vmem:[#allocation2 + $0x7a0] sm:$0xf]  ;;  %v4675_v63 = vld [vmem:[#allocation2 + $0x7ac] sm:$0xf0]  ;;  %v3900_v4 = vor.u32 %v4643_v61, %v3899_v60  ;;  %1752 = vmatpush.bf16.msrb.mxu0 %v3644_v0 }
  0x44   :  { %v3627_v1 = vld [vmem:[#allocation2 + $0x480] sm:$0xf]  ;;  %v4575_v5 = vld [vmem:[#allocation2 + $0x48c] sm:$0xf0]  ;;  %v4028_v7 = vor.u32 %v4675_v63, %v4027_v62  ;;  %1765 = vmatpush.bf16.msrb.mxu1 %v3772_v3 }
  0x45   :  { %v3755_v6 = vld [vmem:[#allocation2 + $0x580] sm:$0xf]  ;;  %v4607_v8 = vld [vmem:[#allocation2 + $0x58c] sm:$0xf0]  ;;  %v3628_v13 = vor.u32 %v4575_v5, %v3627_v1  ;;  %1778 = vmatpush.bf16.msrb.mxu2 %v3900_v4 }
  0x46   :  { %v3883_v9 = vld [vmem:[#allocation2 + $0x680] sm:$0xf]  ;;  %v4639_v10 = vld [vmem:[#allocation2 + $0x68c] sm:$0xf0]  ;;  %v3756_v15 = vor.u32 %v4607_v8, %v3755_v6  ;;  %1791 = vmatpush.bf16.msrb.mxu3 %v4028_v7  ;;  %v4457_v6 = vld [vmem:[#allocation2 + $0xe4] sm:$0xf] }
  0x47   :  { %v4011_v11 = vld [vmem:[#allocation2 + $0x780] sm:$0xf]  ;;  %v4671_v12 = vld [vmem:[#allocation2 + $0x78c] sm:$0xf0]  ;;  %v3884_v16 = vor.u32 %v4639_v10, %v3883_v9  ;;  %1753 = vmatpush.bf16.msrb.mxu0 %v3628_v13  ;;  %v3165_v7 = vld [vmem:[#allocation2 + $0xf0] sm:$0xf0] }
  0x48   :  { %v3611_v14 = vld [vmem:[#allocation2 + $0x460] sm:$0xf]  ;;  %v4571_v17 = vld [vmem:[#allocation2 + $0x46c] sm:$0xf0]  ;;  %v4012_v20 = vor.u32 %v4671_v12, %v4011_v11  ;;  %1766 = vmatpush.bf16.msrb.mxu1 %v3756_v15  ;;  %v4489_v8 = vld [vmem:[#allocation2 + $0x1e4] sm:$0xf] }
  0x49   :  { %v3739_v18 = vld [vmem:[#allocation2 + $0x560] sm:$0xf]  ;;  %v4603_v19 = vld [vmem:[#allocation2 + $0x56c] sm:$0xf0]  ;;  %v3612_v27 = vor.u32 %v4571_v17, %v3611_v14  ;;  %1779 = vmatpush.bf16.msrb.mxu2 %v3884_v16  ;;  %v3293_v9 = vld [vmem:[#allocation2 + $0x1f0] sm:$0xf0] }
  0x4a   :  { %v3867_v21 = vld [vmem:[#allocation2 + $0x660] sm:$0xf]  ;;  %v4635_v22 = vld [vmem:[#allocation2 + $0x66c] sm:$0xf0]  ;;  %v3740_v28 = vor.u32 %v4603_v19, %v3739_v18  ;;  %1792 = vmatpush.bf16.msrb.mxu3 %v4012_v20  ;;  %v4521_v10 = vld [vmem:[#allocation2 + $0x2e4] sm:$0xf] }
  0x4b   :  { %v3995_v23 = vld [vmem:[#allocation2 + $0x760] sm:$0xf]  ;;  %v4667_v24 = vld [vmem:[#allocation2 + $0x76c] sm:$0xf0]  ;;  %v3868_v32 = vor.u32 %v4635_v22, %v3867_v21  ;;  %1754 = vmatpush.bf16.msrb.mxu0 %v3612_v27  ;;  %v3421_v12 = vld [vmem:[#allocation2 + $0x2f0] sm:$0xf0]  ;;  %v3168_v21 = vor.u32 %v4457_v6, %v3165_v7 }
  0x4c   :  { %v3595_v25 = vld [vmem:[#allocation2 + $0x440] sm:$0xf]  ;;  %v4567_v26 = vld [vmem:[#allocation2 + $0x44c] sm:$0xf0]  ;;  %v3996_v37 = vor.u32 %v4667_v24, %v3995_v23  ;;  %1767 = vmatpush.bf16.msrb.mxu1 %v3740_v28  ;;  %v4553_v13 = vld [vmem:[#allocation2 + $0x3e4] sm:$0xf]  ;;  %v3296_v24 = vor.u32 %v4489_v8, %v3293_v9 }
  0x4d   :  { %v3723_v29 = vld [vmem:[#allocation2 + $0x540] sm:$0xf]  ;;  %v130_v30 = vld.sshfl [vmem:[#allocation1 + $0x10] sm:$0xff pattern:$0x73625140]  ;;  %v3596_v45 = vor.u32 %v4567_v26, %v3595_v25  ;;  %1780 = vmatpush.bf16.msrb.mxu2 %v3868_v32  ;;  %v3424_v25 = vor.u32 %v4521_v10, %v3421_v12 }
  0x4e   :  { %v128_v31 = vld.sshfl [vmem:[#allocation1] sm:$0xff pattern:$0x73625140]  ;;  %v5061_v33 = vpack.c.bf16 %v130_v30, %v130_v30  ;;  %v131_v35 = vld.sshfl [vmem:[#allocation1 + $0x18] sm:$0xff pattern:$0x73625140]  ;;  %1793 = vmatpush.bf16.msrb.mxu3 %v3996_v37 }
  0x4f   :  { %v5063_v34 = vpack.c.bf16 %v128_v31, %v128_v31  ;;  %v129_v36 = vld.sshfl [vmem:[#allocation1 + $0x8] sm:$0xff pattern:$0x73625140]  ;;  %v4599_v38 = vld [vmem:[#allocation2 + $0x54c] sm:$0xf0]  ;;  %v5065_v41 = vpack.c.bf16 %v131_v35, %v131_v35  ;;  %1755 = vmatpush.bf16.msrb.mxu0 %v3596_v45 }
  0x50   :  { %v3851_v39 = vld [vmem:[#allocation2 + $0x640] sm:$0xf]  ;;  %v4631_v40 = vld [vmem:[#allocation2 + $0x64c] sm:$0xf0]  ;;  %v5067_v42 = vpack.c.bf16 %v129_v36, %v129_v36  ;;  %1732 = vmatmul.bf16.vlgmr.msra.gmra.mxu2 %v5061_v33  ;;  %v3724_v48 = vor.u32 %v4599_v38, %v3723_v29  ;;  %v3549_v14 = vld [vmem:[#allocation2 + $0x3f0] sm:$0xf0] }
  0x51   :  { %v3979_v43 = vld [vmem:[#allocation2 + $0x740] sm:$0xf]  ;;  %v4663_v44 = vld [vmem:[#allocation2 + $0x74c] sm:$0xf0]  ;;  %1706 = vmatmul.bf16.vlgmr.msra.gmra.mxu0 %v5063_v34  ;;  %1745 = vmatmul.bf16.vlgmr.msra.gmra.mxu3 %v5065_v41  ;;  %v3852_v49 = vor.u32 %v4631_v40, %v3851_v39  ;;  %v4453_v17 = vld [vmem:[#allocation2 + $0xc4] sm:$0xf]  ;;  %v3552_v28 = vor.u32 %v4553_v13, %v3549_v14 }
  0x52   :  { %v3579_v46 = vld [vmem:[#allocation2 + $0x420] sm:$0xf]  ;;  %v4563_v47 = vld [vmem:[#allocation2 + $0x42c] sm:$0xf0]  ;;  %v3980_v53 = vor.u32 %v4663_v44, %v3979_v43  ;;  %1719 = vmatmul.bf16.vlgmr.msra.gmra.mxu1 %v5067_v42  ;;  %v3149_v18 = vld [vmem:[#allocation2 + $0xd0] sm:$0xf0] }
  0x53   :  { %v3707_v50 = vld [vmem:[#allocation2 + $0x520] sm:$0xf]  ;;  %v4595_v51 = vld [vmem:[#allocation2 + $0x52c] sm:$0xf0]  ;;  %v3580_v59 = vor.u32 %v4563_v47, %v3579_v46  ;;  %1768 = vmatpush.bf16.msrb.mxu1 %v3724_v48  ;;  %1781 = vmatpush.bf16.msrb.mxu2 %v3852_v49  ;;  %v4485_v26 = vld [vmem:[#allocation2 + $0x1c4] sm:$0xf]  ;;  %v3152_v39 = vor.u32 %v4453_v17, %v3149_v18 }
  0x54   :  { %v122_v52 = vld [vmem:[%s5235_s0 + $0x8] sm:$0xff]  ;;  %v4627_v55 = vld [vmem:[#allocation2 + $0x62c] sm:$0xf0]  ;;  %v3708_v63 = vor.u32 %v4595_v51, %v3707_v50  ;;  %1794 = vmatpush.bf16.msrb.mxu3 %v3980_v53  ;;  %v3277_v29 = vld [vmem:[#allocation2 + $0x1d0] sm:$0xf0] }
  0x55   :  { %v3835_v54 = vld [vmem:[#allocation2 + $0x620] sm:$0xf]  ;;  %127 = vst [vmem:[#allocation1 + $0x20] ss:$4 sm:$0xff] %v122_v52  ;;  %v4659_v57 = vld [vmem:[#allocation2 + $0x72c] sm:$0xf0]  ;;  %1756 = vmatpush.bf16.msrb.mxu0 %v3580_v59  ;;  %v3280_v43 = vor.u32 %v4485_v26, %v3277_v29 }
  0x56   :  { %v3963_v56 = vld [vmem:[#allocation2 + $0x720] sm:$0xf]  ;;  %v4559_v60 = vld [vmem:[#allocation2 + $0x40c] sm:$0xf0]  ;;  %v3836_v0 = vor.u32 %v4627_v55, %v3835_v54  ;;  %v4517_v30 = vld [vmem:[#allocation2 + $0x2c4] sm:$0xf] }
  0x57   :  { %v3563_v58 = vld [vmem:[#allocation2 + $0x400] sm:$0xf]  ;;  %v4591_v62 = vld [vmem:[#allocation2 + $0x50c] sm:$0xf0]  ;;  %v3964_v4 = vor.u32 %v4659_v57, %v3963_v56  ;;  %1769 = vmatpush.bf16.msrb.mxu1 %v3708_v63  ;;  %v3405_v31 = vld [vmem:[#allocation2 + $0x2d0] sm:$0xf0] }
  0x58   :  { %v3691_v61 = vld [vmem:[#allocation2 + $0x500] sm:$0xf]  ;;  %v4623_v2 = vld [vmem:[#allocation2 + $0x60c] sm:$0xf0]  ;;  %v3564_v11 = vor.u32 %v4559_v60, %v3563_v58  ;;  %1782 = vmatpush.bf16.msrb.mxu2 %v3836_v0  ;;  %v4549_v35 = vld [vmem:[#allocation2 + $0x3c4] sm:$0xf]  ;;  %v3408_v44 = vor.u32 %v4517_v30, %v3405_v31 }
  0x59   :  { %v3819_v1 = vld [vmem:[#allocation2 + $0x600] sm:$0xf]  ;;  %v4655_v5 = vld [vmem:[#allocation2 + $0x70c] sm:$0xf0]  ;;  %v3692_v15 = vor.u32 %v4591_v62, %v3691_v61  ;;  %1795 = vmatpush.bf16.msrb.mxu3 %v3964_v4  ;;  %v3533_v36 = vld [vmem:[#allocation2 + $0x3d0] sm:$0xf0] }
  0x5a   :  { %v3947_v3 = vld [vmem:[#allocation2 + $0x700] sm:$0xf]  ;;  %v3820_v16 = vor.u32 %v4623_v2, %v3819_v1  ;;  %1757 = vmatpush.bf16.msrb.mxu0 %v3564_v11  ;;  %v4449_v45 = vld [vmem:[#allocation2 + $0xa4] sm:$0xf]  ;;  %v3133_v46 = vld [vmem:[#allocation2 + $0xb0] sm:$0xf0]  ;;  %v3536_v48 = vor.u32 %v4549_v35, %v3533_v36 }
  0x5b   :  { %v3948_v20 = vor.u32 %v4655_v5, %v3947_v3  ;;  %1770 = vmatpush.bf16.msrb.mxu1 %v3692_v15  ;;  %v4481_v47 = vld [vmem:[#allocation2 + $0x1a4] sm:$0xf]  ;;  %v3261_v49 = vld [vmem:[#allocation2 + $0x1b0] sm:$0xf0]  ;;  %v3136_v54 = vor.u32 %v4449_v45, %v3133_v46 }
  0x5c   :  { %v134_v19 = vld.sshfl [vmem:[#allocation1 + $0x30] sm:$0xff pattern:$0x73625140]  ;;  %v132_v22 = vld.sshfl [vmem:[#allocation1 + $0x20] sm:$0xff pattern:$0x73625140]  ;;  %1783 = vmatpush.bf16.msrb.mxu2 %v3820_v16  ;;  %v3264_v55 = vor.u32 %v4481_v47, %v3261_v49 }
  0x5d   :  { %v135_v23 = vld.sshfl [vmem:[#allocation1 + $0x38] sm:$0xff pattern:$0x73625140]  ;;  %v133_v27 = vld.sshfl [vmem:[#allocation1 + $0x28] sm:$0xff pattern:$0x73625140]  ;;  %v5076_v32 = vpack.c.bf16 %v134_v19, %v134_v19  ;;  %v5078_v37 = vpack.c.bf16 %v132_v22, %v132_v22  ;;  %1796 = vmatpush.bf16.msrb.mxu3 %v3948_v20 }
  0x5e   :  { %v5080_v38 = vpack.c.bf16 %v135_v23, %v135_v23  ;;  %1802 = vmatpush.bf16.msra.mxu0 %v3168_v21  ;;  %v5082_v40 = vpack.c.bf16 %v133_v27, %v133_v27  ;;  %v4513_v50 = vld [vmem:[#allocation2 + $0x2a4] sm:$0xf]  ;;  %v3389_v51 = vld [vmem:[#allocation2 + $0x2b0] sm:$0xf0] }
  0x5f   :  { %1815 = vmatpush.bf16.msra.mxu1 %v3296_v24  ;;  %v4545_v52 = vld [vmem:[#allocation2 + $0x3a4] sm:$0xf]  ;;  %v3517_v53 = vld [vmem:[#allocation2 + $0x3b0] sm:$0xf0]  ;;  %v3392_v56 = vor.u32 %v4513_v50, %v3389_v51 }
  0x60   :  { %1828 = vmatpush.bf16.msra.mxu2 %v3424_v25  ;;  %v4445_v57 = vld [vmem:[#allocation2 + $0x84] sm:$0xf]  ;;  %v3117_v58 = vld [vmem:[#allocation2 + $0x90] sm:$0xf0]  ;;  %v3520_v60 = vor.u32 %v4545_v52, %v3517_v53 }
  0x61   :  { %1841 = vmatpush.bf16.msra.mxu3 %v3552_v28  ;;  %1784 = vmatmul.bf16.vlgmr.msrb.gmra.mxu2 %v5076_v32  ;;  %v4477_v59 = vld [vmem:[#allocation2 + $0x184] sm:$0xf]  ;;  %v3245_v61 = vld [vmem:[#allocation2 + $0x190] sm:$0xf0]  ;;  %v3120_v2 = vor.u32 %v4445_v57, %v3117_v58 }
  0x62   :  { %1758 = vmatmul.bf16.vlgmr.msrb.gmra.mxu0 %v5078_v37  ;;  %1797 = vmatmul.bf16.vlgmr.msrb.gmra.mxu3 %v5080_v38  ;;  %v4509_v62 = vld [vmem:[#allocation2 + $0x284] sm:$0xf]  ;;  %v3373_v63 = vld [vmem:[#allocation2 + $0x290] sm:$0xf0]  ;;  %v3248_v3 = vor.u32 %v4477_v59, %v3245_v61 }
  0x63   :  { %1803 = vmatpush.bf16.msra.mxu0 %v3152_v39  ;;  %1771 = vmatmul.bf16.vlgmr.msrb.gmra.mxu1 %v5082_v40  ;;  %v4541_v0 = vld [vmem:[#allocation2 + $0x384] sm:$0xf]  ;;  %v3501_v1 = vld [vmem:[#allocation2 + $0x390] sm:$0xf0]  ;;  %v3376_v4 = vor.u32 %v4509_v62, %v3373_v63 }
  0x64   :  { %1816 = vmatpush.bf16.msra.mxu1 %v3280_v43  ;;  %1829 = vmatpush.bf16.msra.mxu2 %v3408_v44  ;;  %v4441_v5 = vld [vmem:[#allocation2 + $0x64] sm:$0xf]  ;;  %v3101_v6 = vld [vmem:[#allocation2 + $0x70] sm:$0xf0]  ;;  %v3504_v8 = vor.u32 %v4541_v0, %v3501_v1 }
  0x65   :  { %1842 = vmatpush.bf16.msra.mxu3 %v3536_v48  ;;  %v4473_v7 = vld [vmem:[#allocation2 + $0x164] sm:$0xf]  ;;  %v3229_v9 = vld [vmem:[#allocation2 + $0x170] sm:$0xf0]  ;;  %v3104_v14 = vor.u32 %v4441_v5, %v3101_v6 }
  0x66   :  { %v4505_v10 = vld [vmem:[#allocation2 + $0x264] sm:$0xf]  ;;  %v3357_v11 = vld [vmem:[#allocation2 + $0x270] sm:$0xf0]  ;;  %v3232_v15 = vor.u32 %v4473_v7, %v3229_v9 }
  0x67   :  { %1804 = vmatpush.bf16.msra.mxu0 %v3136_v54  ;;  %v4537_v12 = vld [vmem:[#allocation2 + $0x364] sm:$0xf]  ;;  %v3485_v13 = vld [vmem:[#allocation2 + $0x370] sm:$0xf0]  ;;  %v3360_v16 = vor.u32 %v4505_v10, %v3357_v11 }
  0x68   :  { %1817 = vmatpush.bf16.msra.mxu1 %v3264_v55  ;;  %1830 = vmatpush.bf16.msra.mxu2 %v3392_v56  ;;  %v4437_v17 = vld [vmem:[#allocation2 + $0x44] sm:$0xf]  ;;  %v3085_v18 = vld [vmem:[#allocation2 + $0x50] sm:$0xf0]  ;;  %v3488_v20 = vor.u32 %v4537_v12, %v3485_v13 }
  0x69   :  { %1843 = vmatpush.bf16.msra.mxu3 %v3520_v60  ;;  %v4469_v19 = vld [vmem:[#allocation2 + $0x144] sm:$0xf]  ;;  %v3213_v21 = vld [vmem:[#allocation2 + $0x150] sm:$0xf0]  ;;  %v3088_v26 = vor.u32 %v4437_v17, %v3085_v18 }
  0x6a   :  { %v4501_v22 = vld [vmem:[#allocation2 + $0x244] sm:$0xf]  ;;  %v3341_v23 = vld [vmem:[#allocation2 + $0x250] sm:$0xf0]  ;;  %v3216_v27 = vor.u32 %v4469_v19, %v3213_v21 }
  0x6b   :  { %1805 = vmatpush.bf16.msra.mxu0 %v3120_v2  ;;  %v4533_v24 = vld [vmem:[#allocation2 + $0x344] sm:$0xf]  ;;  %v3469_v25 = vld [vmem:[#allocation2 + $0x350] sm:$0xf0]  ;;  %v3344_v28 = vor.u32 %v4501_v22, %v3341_v23 }
  0x6c   :  { %1818 = vmatpush.bf16.msra.mxu1 %v3248_v3  ;;  %1831 = vmatpush.bf16.msra.mxu2 %v3376_v4  ;;  %v4433_v29 = vld [vmem:[#allocation2 + $0x24] sm:$0xf]  ;;  %v3069_v30 = vld [vmem:[#allocation2 + $0x30] sm:$0xf0]  ;;  %v3472_v35 = vor.u32 %v4533_v24, %v3469_v25 }
  0x6d   :  { %1844 = vmatpush.bf16.msra.mxu3 %v3504_v8  ;;  %v4465_v31 = vld [vmem:[#allocation2 + $0x124] sm:$0xf]  ;;  %v3197_v36 = vld [vmem:[#allocation2 + $0x130] sm:$0xf0]  ;;  %v3072_v46 = vor.u32 %v4433_v29, %v3069_v30 }
  0x6e   :  { %v4497_v39 = vld [vmem:[#allocation2 + $0x224] sm:$0xf]  ;;  %v3325_v43 = vld [vmem:[#allocation2 + $0x230] sm:$0xf0]  ;;  %v3200_v49 = vor.u32 %v4465_v31, %v3197_v36 }
  0x6f   :  { %1806 = vmatpush.bf16.msra.mxu0 %v3104_v14  ;;  %v4529_v44 = vld [vmem:[#allocation2 + $0x324] sm:$0xf]  ;;  %v3453_v45 = vld [vmem:[#allocation2 + $0x330] sm:$0xf0]  ;;  %v3328_v50 = vor.u32 %v4497_v39, %v3325_v43 }
  0x70   :  { %1819 = vmatpush.bf16.msra.mxu1 %v3232_v15  ;;  %1832 = vmatpush.bf16.msra.mxu2 %v3360_v16  ;;  %v4429_v47 = vld [vmem:[#allocation2 + $0x4] sm:$0xf]  ;;  %v3053_v48 = vld [vmem:[#allocation2 + $0x10] sm:$0xf0]  ;;  %v3456_v54 = vor.u32 %v4529_v44, %v3453_v45 }
  0x71   :  { %1845 = vmatpush.bf16.msra.mxu3 %v3488_v20  ;;  %v4461_v51 = vld [vmem:[#allocation2 + $0x104] sm:$0xf]  ;;  %v3181_v52 = vld [vmem:[#allocation2 + $0x110] sm:$0xf0]  ;;  %v3056_v61 = vor.u32 %v4429_v47, %v3053_v48 }
  0x72   :  { %v4493_v53 = vld [vmem:[#allocation2 + $0x204] sm:$0xf]  ;;  %v3309_v55 = vld [vmem:[#allocation2 + $0x210] sm:$0xf0]  ;;  %v3184_v1 = vor.u32 %v4461_v51, %v3181_v52 }
  0x73   :  { %1807 = vmatpush.bf16.msra.mxu0 %v3088_v26  ;;  %v4525_v56 = vld [vmem:[#allocation2 + $0x304] sm:$0xf]  ;;  %v3437_v57 = vld [vmem:[#allocation2 + $0x310] sm:$0xf0]  ;;  %v3312_v2 = vor.u32 %v4493_v53, %v3309_v55 }
  0x74   :  { %1820 = vmatpush.bf16.msra.mxu1 %v3216_v27  ;;  %1833 = vmatpush.bf16.msra.mxu2 %v3344_v28  ;;  %v4585_v58 = vld [vmem:[#allocation2 + $0x4e4] sm:$0xf]  ;;  %v3677_v59 = vld [vmem:[#allocation2 + $0x4f0] sm:$0xf0]  ;;  %v3440_v5 = vor.u32 %v4525_v56, %v3437_v57 }
  0x75   :  { %1846 = vmatpush.bf16.msra.mxu3 %v3472_v35  ;;  %v4617_v60 = vld [vmem:[#allocation2 + $0x5e4] sm:$0xf]  ;;  %v3805_v62 = vld [vmem:[#allocation2 + $0x5f0] sm:$0xf0]  ;;  %v3680_v6 = vor.u32 %v4585_v58, %v3677_v59 }
  0x76   :  { %v4649_v63 = vld [vmem:[#allocation2 + $0x6e4] sm:$0xf]  ;;  %v3933_v0 = vld [vmem:[#allocation2 + $0x6f0] sm:$0xf0]  ;;  %v3808_v7 = vor.u32 %v4617_v60, %v3805_v62 }
  0x77   :  { %1808 = vmatpush.bf16.msra.mxu0 %v3072_v46  ;;  %v4681_v3 = vld [vmem:[#allocation2 + $0x7e4] sm:$0xf]  ;;  %v4061_v4 = vld [vmem:[#allocation2 + $0x7f0] sm:$0xf0]  ;;  %v3936_v8 = vor.u32 %v4649_v63, %v3933_v0 }
  0x78   :  { %1821 = vmatpush.bf16.msra.mxu1 %v3200_v49  ;;  %1834 = vmatpush.bf16.msra.mxu2 %v3328_v50  ;;  %v4581_v9 = vld [vmem:[#allocation2 + $0x4c4] sm:$0xf]  ;;  %v3661_v10 = vld [vmem:[#allocation2 + $0x4d0] sm:$0xf0]  ;;  %v4064_v12 = vor.u32 %v4681_v3, %v4061_v4 }
  0x79   :  { %1847 = vmatpush.bf16.msra.mxu3 %v3456_v54  ;;  %v4613_v11 = vld [vmem:[#allocation2 + $0x5c4] sm:$0xf]  ;;  %v3789_v13 = vld [vmem:[#allocation2 + $0x5d0] sm:$0xf0]  ;;  %v3664_v18 = vor.u32 %v4581_v9, %v3661_v10 }
  0x7a   :  { %v4645_v14 = vld [vmem:[#allocation2 + $0x6c4] sm:$0xf]  ;;  %v3917_v15 = vld [vmem:[#allocation2 + $0x6d0] sm:$0xf0]  ;;  %v3792_v21 = vor.u32 %v4613_v11, %v3789_v13 }
  0x7b   :  { %1809 = vmatpush.bf16.msra.mxu0 %v3056_v61  ;;  %v4677_v16 = vld [vmem:[#allocation2 + $0x7c4] sm:$0xf]  ;;  %v4045_v17 = vld [vmem:[#allocation2 + $0x7d0] sm:$0xf0]  ;;  %v3920_v22 = vor.u32 %v4645_v14, %v3917_v15 }
  0x7c   :  { %1822 = vmatpush.bf16.msra.mxu1 %v3184_v1  ;;  %1835 = vmatpush.bf16.msra.mxu2 %v3312_v2  ;;  %v4577_v19 = vld [vmem:[#allocation2 + $0x4a4] sm:$0xf]  ;;  %v3645_v20 = vld [vmem:[#allocation2 + $0x4b0] sm:$0xf0]  ;;  %v4048_v26 = vor.u32 %v4677_v16, %v4045_v17 }
  0x7d   :  { %1848 = vmatpush.bf16.msra.mxu3 %v3440_v5  ;;  %v4609_v23 = vld [vmem:[#allocation2 + $0x5a4] sm:$0xf]  ;;  %v3773_v24 = vld [vmem:[#allocation2 + $0x5b0] sm:$0xf0]  ;;  %v3648_v30 = vor.u32 %v4577_v19, %v3645_v20 }
  0x7e   :  { %v4641_v25 = vld [vmem:[#allocation2 + $0x6a4] sm:$0xf]  ;;  %v3901_v27 = vld [vmem:[#allocation2 + $0x6b0] sm:$0xf0]  ;;  %1810 = vmatmul.bf16.vlgmr.msra.gmra.mxu0 %v5063_v34  ;;  %v3776_v36 = vor.u32 %v4609_v23, %v3773_v24 }
  0x7f   :  { %1854 = vmatpush.bf16.msrb.mxu0 %v3680_v6  ;;  %v4673_v28 = vld [vmem:[#allocation2 + $0x7a4] sm:$0xf]  ;;  %v4029_v29 = vld [vmem:[#allocation2 + $0x7b0] sm:$0xf0]  ;;  %1836 = vmatmul.bf16.vlgmr.msra.gmra.mxu2 %v5061_v33  ;;  %v3904_v39 = vor.u32 %v4641_v25, %v3901_v27 }
  0x80   :  { %1867 = vmatpush.bf16.msrb.mxu1 %v3808_v7  ;;  %1880 = vmatpush.bf16.msrb.mxu2 %v3936_v8  ;;  %v4573_v31 = vld [vmem:[#allocation2 + $0x484] sm:$0xf]  ;;  %v3629_v35 = vld [vmem:[#allocation2 + $0x490] sm:$0xf0]  ;;  %v4032_v46 = vor.u32 %v4673_v28, %v4029_v29 }
  0x81   :  { %1893 = vmatpush.bf16.msrb.mxu3 %v4064_v12  ;;  %1823 = vmatmul.bf16.vlgmr.msra.gmra.mxu1 %v5067_v42  ;;  %v4605_v43 = vld [vmem:[#allocation2 + $0x584] sm:$0xf]  ;;  %v3757_v44 = vld [vmem:[#allocation2 + $0x590] sm:$0xf0]  ;;  %v3632_v50 = vor.u32 %v4573_v31, %v3629_v35 }
  0x82   :  { %1849 = vmatmul.bf16.vlgmr.msra.gmra.mxu3 %v5065_v41  ;;  %v4637_v45 = vld [vmem:[#allocation2 + $0x684] sm:$0xf]  ;;  %v3885_v47 = vld [vmem:[#allocation2 + $0x690] sm:$0xf0]  ;;  %v3760_v51 = vor.u32 %v4605_v43, %v3757_v44  ;;  %v4460_v43 = vld [vmem:[#allocation2 + $0xf4] sm:$0xf0] }
  0x83   :  { %1855 = vmatpush.bf16.msrb.mxu0 %v3664_v18  ;;  %v4669_v48 = vld [vmem:[#allocation2 + $0x784] sm:$0xf]  ;;  %v4013_v49 = vld [vmem:[#allocation2 + $0x790] sm:$0xf0]  ;;  %v3888_v52 = vor.u32 %v4637_v45, %v3885_v47  ;;  %v3299_v44 = vld [vmem:[#allocation2 + $0x1e8] sm:$0xf] }
  0x84   :  { %1868 = vmatpush.bf16.msrb.mxu1 %v3792_v21  ;;  %1881 = vmatpush.bf16.msrb.mxu2 %v3920_v22  ;;  %v4569_v53 = vld [vmem:[#allocation2 + $0x464] sm:$0xf]  ;;  %v3613_v54 = vld [vmem:[#allocation2 + $0x470] sm:$0xf0]  ;;  %v4016_v56 = vor.u32 %v4669_v48, %v4013_v49  ;;  %v3427_v47 = vld [vmem:[#allocation2 + $0x2e8] sm:$0xf] }
  0x85   :  { %1894 = vmatpush.bf16.msrb.mxu3 %v4048_v26  ;;  %v4601_v55 = vld [vmem:[#allocation2 + $0x564] sm:$0xf]  ;;  %v3741_v57 = vld [vmem:[#allocation2 + $0x570] sm:$0xf0]  ;;  %v3616_v62 = vor.u32 %v4569_v53, %v3613_v54  ;;  %v4524_v48 = vld [vmem:[#allocation2 + $0x2f4] sm:$0xf0] }
  0x86   :  { %v4633_v58 = vld [vmem:[#allocation2 + $0x664] sm:$0xf]  ;;  %v3869_v59 = vld [vmem:[#allocation2 + $0x670] sm:$0xf0]  ;;  %v3744_v63 = vor.u32 %v4601_v55, %v3741_v57  ;;  %v3155_v57 = vld [vmem:[#allocation2 + $0xc8] sm:$0xf] }
  0x87   :  { %1856 = vmatpush.bf16.msrb.mxu0 %v3648_v30  ;;  %v4665_v60 = vld [vmem:[#allocation2 + $0x764] sm:$0xf]  ;;  %v3997_v61 = vld [vmem:[#allocation2 + $0x770] sm:$0xf0]  ;;  %v3872_v0 = vor.u32 %v4633_v58, %v3869_v59  ;;  %v4456_v58 = vld [vmem:[#allocation2 + $0xd4] sm:$0xf0] }
  0x88   :  { %1869 = vmatpush.bf16.msrb.mxu1 %v3776_v36  ;;  %1882 = vmatpush.bf16.msrb.mxu2 %v3904_v39  ;;  %v4565_v1 = vld [vmem:[#allocation2 + $0x444] sm:$0xf]  ;;  %v3597_v2 = vld [vmem:[#allocation2 + $0x450] sm:$0xf0]  ;;  %v4000_v4 = vor.u32 %v4665_v60, %v3997_v61  ;;  %v3171_v39 = vld [vmem:[#allocation2 + $0xe8] sm:$0xf] }
  0x89   :  { %1895 = vmatpush.bf16.msrb.mxu3 %v4032_v46  ;;  %v4597_v3 = vld [vmem:[#allocation2 + $0x544] sm:$0xf]  ;;  %v3725_v5 = vld [vmem:[#allocation2 + $0x550] sm:$0xf0]  ;;  %v3600_v10 = vor.u32 %v4565_v1, %v3597_v2  ;;  %v4492_v46 = vld [vmem:[#allocation2 + $0x1f4] sm:$0xf0]  ;;  %v3172_v54 = vor.u32 %v4460_v43, %v3171_v39  ;;  %v3156_v2 = vor.u32 %v4456_v58, %v3155_v57 }
  0x8a   :  { %v4629_v6 = vld [vmem:[#allocation2 + $0x644] sm:$0xf]  ;;  %v3853_v7 = vld [vmem:[#allocation2 + $0x650] sm:$0xf0]  ;;  %v3728_v11 = vor.u32 %v4597_v3, %v3725_v5  ;;  %v3300_v55 = vor.u32 %v4492_v46, %v3299_v44  ;;  %v3283_v59 = vld [vmem:[#allocation2 + $0x1c8] sm:$0xf] }
  0x8b   :  { %1857 = vmatpush.bf16.msrb.mxu0 %v3632_v50  ;;  %v4661_v8 = vld [vmem:[#allocation2 + $0x744] sm:$0xf]  ;;  %v3981_v9 = vld [vmem:[#allocation2 + $0x750] sm:$0xf0]  ;;  %v3856_v12 = vor.u32 %v4629_v6, %v3853_v7  ;;  %v4488_v61 = vld [vmem:[#allocation2 + $0x1d4] sm:$0xf0] }
  0x8c   :  { %1870 = vmatpush.bf16.msrb.mxu1 %v3760_v51  ;;  %1883 = vmatpush.bf16.msrb.mxu2 %v3888_v52  ;;  %v4561_v13 = vld [vmem:[#allocation2 + $0x424] sm:$0xf]  ;;  %v3581_v14 = vld [vmem:[#allocation2 + $0x430] sm:$0xf0]  ;;  %v3984_v16 = vor.u32 %v4661_v8, %v3981_v9  ;;  %v3555_v51 = vld [vmem:[#allocation2 + $0x3e8] sm:$0xf]  ;;  %v3284_v3 = vor.u32 %v4488_v61, %v3283_v59 }
  0x8d   :  { %1896 = vmatpush.bf16.msrb.mxu3 %v4016_v56  ;;  %v4593_v15 = vld [vmem:[#allocation2 + $0x524] sm:$0xf]  ;;  %v3709_v17 = vld [vmem:[#allocation2 + $0x530] sm:$0xf0]  ;;  %v3584_v22 = vor.u32 %v4561_v13, %v3581_v14  ;;  %v4556_v52 = vld [vmem:[#allocation2 + $0x3f4] sm:$0xf0]  ;;  %v3428_v56 = vor.u32 %v4524_v48, %v3427_v47 }
  0x8e   :  { %v4625_v18 = vld [vmem:[#allocation2 + $0x624] sm:$0xf]  ;;  %v3837_v19 = vld [vmem:[#allocation2 + $0x630] sm:$0xf0]  ;;  %v3712_v25 = vor.u32 %v4593_v15, %v3709_v17  ;;  %v3556_v60 = vor.u32 %v4556_v52, %v3555_v51  ;;  %v4552_v1 = vld [vmem:[#allocation2 + $0x3d4] sm:$0xf0] }
  0x8f   :  { %1858 = vmatpush.bf16.msrb.mxu0 %v3616_v62  ;;  %v4657_v20 = vld [vmem:[#allocation2 + $0x724] sm:$0xf]  ;;  %v3965_v21 = vld [vmem:[#allocation2 + $0x730] sm:$0xf0]  ;;  %v3840_v26 = vor.u32 %v4625_v18, %v3837_v19  ;;  %v3411_v62 = vld [vmem:[#allocation2 + $0x2c8] sm:$0xf] }
  0x90   :  { %1871 = vmatpush.bf16.msrb.mxu1 %v3744_v63  ;;  %1884 = vmatpush.bf16.msrb.mxu2 %v3872_v0  ;;  %v4557_v23 = vld [vmem:[#allocation2 + $0x404] sm:$0xf]  ;;  %v3565_v24 = vld [vmem:[#allocation2 + $0x410] sm:$0xf0]  ;;  %v3968_v30 = vor.u32 %v4657_v20, %v3965_v21  ;;  %v4520_v63 = vld [vmem:[#allocation2 + $0x2d4] sm:$0xf0] }
  0x91   :  { %1897 = vmatpush.bf16.msrb.mxu3 %v4000_v4  ;;  %v4589_v27 = vld [vmem:[#allocation2 + $0x504] sm:$0xf]  ;;  %v3693_v28 = vld [vmem:[#allocation2 + $0x510] sm:$0xf0]  ;;  %v3568_v45 = vor.u32 %v4557_v23, %v3565_v24  ;;  %v3539_v0 = vld [vmem:[#allocation2 + $0x3c8] sm:$0xf]  ;;  %v3412_v4 = vor.u32 %v4520_v63, %v3411_v62 }
  0x92   :  { %v4621_v29 = vld [vmem:[#allocation2 + $0x604] sm:$0xf]  ;;  %v3821_v31 = vld [vmem:[#allocation2 + $0x610] sm:$0xf0]  ;;  %v3696_v49 = vor.u32 %v4589_v27, %v3693_v28  ;;  %v3139_v5 = vld [vmem:[#allocation2 + $0xa8] sm:$0xf]  ;;  %v3540_v8 = vor.u32 %v4552_v1, %v3539_v0 }
  0x93   :  { %1859 = vmatpush.bf16.msrb.mxu0 %v3600_v10  ;;  %v4653_v35 = vld [vmem:[#allocation2 + $0x704] sm:$0xf]  ;;  %v3949_v36 = vld [vmem:[#allocation2 + $0x710] sm:$0xf0]  ;;  %v3824_v50 = vor.u32 %v4621_v29, %v3821_v31  ;;  %v4452_v6 = vld [vmem:[#allocation2 + $0xb4] sm:$0xf0] }
  0x94   :  { %1872 = vmatpush.bf16.msrb.mxu1 %v3728_v11  ;;  %1885 = vmatpush.bf16.msrb.mxu2 %v3856_v12  ;;  %v3952_v53 = vor.u32 %v4653_v35, %v3949_v36  ;;  %v3267_v7 = vld [vmem:[#allocation2 + $0x1a8] sm:$0xf]  ;;  %v4484_v9 = vld [vmem:[#allocation2 + $0x1b4] sm:$0xf0]  ;;  %v3140_v14 = vor.u32 %v4452_v6, %v3139_v5 }
  0x95   :  { %1898 = vmatpush.bf16.msrb.mxu3 %v3984_v16  ;;  %v3395_v10 = vld [vmem:[#allocation2 + $0x2a8] sm:$0xf]  ;;  %v4516_v11 = vld [vmem:[#allocation2 + $0x2b4] sm:$0xf0]  ;;  %v3268_v15 = vor.u32 %v4484_v9, %v3267_v7 }
  0x96   :  { %v3523_v12 = vld [vmem:[#allocation2 + $0x3a8] sm:$0xf]  ;;  %v4548_v13 = vld [vmem:[#allocation2 + $0x3b4] sm:$0xf0]  ;;  %v3396_v16 = vor.u32 %v4516_v11, %v3395_v10 }
  0x97   :  { %1860 = vmatpush.bf16.msrb.mxu0 %v3584_v22  ;;  %v3123_v17 = vld [vmem:[#allocation2 + $0x88] sm:$0xf]  ;;  %v4448_v18 = vld [vmem:[#allocation2 + $0x94] sm:$0xf0]  ;;  %v3524_v20 = vor.u32 %v4548_v13, %v3523_v12 }
  0x98   :  { %1873 = vmatpush.bf16.msrb.mxu1 %v3712_v25  ;;  %1886 = vmatpush.bf16.msrb.mxu2 %v3840_v26  ;;  %v3251_v19 = vld [vmem:[#allocation2 + $0x188] sm:$0xf]  ;;  %v4480_v21 = vld [vmem:[#allocation2 + $0x194] sm:$0xf0]  ;;  %v3124_v26 = vor.u32 %v4448_v18, %v3123_v17 }
  0x99   :  { %1899 = vmatpush.bf16.msrb.mxu3 %v3968_v30  ;;  %v3379_v22 = vld [vmem:[#allocation2 + $0x288] sm:$0xf]  ;;  %v4512_v23 = vld [vmem:[#allocation2 + $0x294] sm:$0xf0]  ;;  %v3252_v27 = vor.u32 %v4480_v21, %v3251_v19 }
  0x9a   :  { %v3507_v24 = vld [vmem:[#allocation2 + $0x388] sm:$0xf]  ;;  %v4544_v25 = vld [vmem:[#allocation2 + $0x394] sm:$0xf0]  ;;  %v3380_v28 = vor.u32 %v4512_v23, %v3379_v22 }
  0x9b   :  { %1861 = vmatpush.bf16.msrb.mxu0 %v3568_v45  ;;  %v3107_v29 = vld [vmem:[#allocation2 + $0x68] sm:$0xf]  ;;  %v4444_v30 = vld [vmem:[#allocation2 + $0x74] sm:$0xf0]  ;;  %v3508_v35 = vor.u32 %v4544_v25, %v3507_v24 }
  0x9c   :  { %1874 = vmatpush.bf16.msrb.mxu1 %v3696_v49  ;;  %1887 = vmatpush.bf16.msrb.mxu2 %v3824_v50  ;;  %v3235_v31 = vld [vmem:[#allocation2 + $0x168] sm:$0xf]  ;;  %v4476_v36 = vld [vmem:[#allocation2 + $0x174] sm:$0xf0]  ;;  %v3108_v46 = vor.u32 %v4444_v30, %v3107_v29 }
  0x9d   :  { %1900 = vmatpush.bf16.msrb.mxu3 %v3952_v53  ;;  %v3363_v39 = vld [vmem:[#allocation2 + $0x268] sm:$0xf]  ;;  %v4508_v43 = vld [vmem:[#allocation2 + $0x274] sm:$0xf0]  ;;  %v3236_v47 = vor.u32 %v4476_v36, %v3235_v31 }
  0x9e   :  { %1862 = vmatmul.bf16.vlgmr.msrb.gmra.mxu0 %v5078_v37  ;;  %v3491_v44 = vld [vmem:[#allocation2 + $0x368] sm:$0xf]  ;;  %v4540_v45 = vld [vmem:[#allocation2 + $0x374] sm:$0xf0]  ;;  %v3364_v48 = vor.u32 %v4508_v43, %v3363_v39 }
  0x9f   :  { %1906 = vmatpush.bf16.msra.mxu0 %v3172_v54  ;;  %1888 = vmatmul.bf16.vlgmr.msrb.gmra.mxu2 %v5076_v32  ;;  %v3091_v49 = vld [vmem:[#allocation2 + $0x48] sm:$0xf]  ;;  %v4440_v50 = vld [vmem:[#allocation2 + $0x54] sm:$0xf0]  ;;  %v3492_v52 = vor.u32 %v4540_v45, %v3491_v44 }
  0xa0   :  { %1919 = vmatpush.bf16.msra.mxu1 %v3300_v55  ;;  %1932 = vmatpush.bf16.msra.mxu2 %v3428_v56  ;;  %v3219_v51 = vld [vmem:[#allocation2 + $0x148] sm:$0xf]  ;;  %v4472_v53 = vld [vmem:[#allocation2 + $0x154] sm:$0xf0]  ;;  %v3092_v58 = vor.u32 %v4440_v50, %v3091_v49 }
  0xa1   :  { %1945 = vmatpush.bf16.msra.mxu3 %v3556_v60  ;;  %1875 = vmatmul.bf16.vlgmr.msrb.gmra.mxu1 %v5082_v40  ;;  %v3347_v54 = vld [vmem:[#allocation2 + $0x248] sm:$0xf]  ;;  %v4504_v55 = vld [vmem:[#allocation2 + $0x254] sm:$0xf0]  ;;  %v3220_v59 = vor.u32 %v4472_v53, %v3219_v51 }
  0xa2   :  { %1901 = vmatmul.bf16.vlgmr.msrb.gmra.mxu3 %v5080_v38  ;;  %v3475_v56 = vld [vmem:[#allocation2 + $0x348] sm:$0xf]  ;;  %v4536_v57 = vld [vmem:[#allocation2 + $0x354] sm:$0xf0]  ;;  %v3348_v60 = vor.u32 %v4504_v55, %v3347_v54 }
  0xa3   :  { %1907 = vmatpush.bf16.msra.mxu0 %v3156_v2  ;;  %v3075_v61 = vld [vmem:[#allocation2 + $0x28] sm:$0xf]  ;;  %v4436_v62 = vld [vmem:[#allocation2 + $0x34] sm:$0xf0]  ;;  %v3476_v0 = vor.u32 %v4536_v57, %v3475_v56 }
  0xa4   :  { %1920 = vmatpush.bf16.msra.mxu1 %v3284_v3  ;;  %1933 = vmatpush.bf16.msra.mxu2 %v3412_v4  ;;  %v3203_v63 = vld [vmem:[#allocation2 + $0x128] sm:$0xf]  ;;  %v4468_v1 = vld [vmem:[#allocation2 + $0x134] sm:$0xf0]  ;;  %v3076_v6 = vor.u32 %v4436_v62, %v3075_v61 }
  0xa5   :  { %1946 = vmatpush.bf16.msra.mxu3 %v3540_v8  ;;  %v3331_v2 = vld [vmem:[#allocation2 + $0x228] sm:$0xf]  ;;  %v4500_v3 = vld [vmem:[#allocation2 + $0x234] sm:$0xf0]  ;;  %v3204_v9 = vor.u32 %v4468_v1, %v3203_v63 }
  0xa6   :  { %v3459_v4 = vld [vmem:[#allocation2 + $0x328] sm:$0xf]  ;;  %v4532_v5 = vld [vmem:[#allocation2 + $0x334] sm:$0xf0]  ;;  %v3332_v10 = vor.u32 %v4500_v3, %v3331_v2 }
  0xa7   :  { %1908 = vmatpush.bf16.msra.mxu0 %v3140_v14  ;;  %v3059_v7 = vld [vmem:[#allocation2 + $0x8] sm:$0xf]  ;;  %v4432_v8 = vld [vmem:[#allocation2 + $0x14] sm:$0xf0]  ;;  %v3460_v14 = vor.u32 %v4532_v5, %v3459_v4 }
  0xa8   :  { %1921 = vmatpush.bf16.msra.mxu1 %v3268_v15  ;;  %1934 = vmatpush.bf16.msra.mxu2 %v3396_v16  ;;  %v3187_v11 = vld [vmem:[#allocation2 + $0x108] sm:$0xf]  ;;  %v4464_v12 = vld [vmem:[#allocation2 + $0x114] sm:$0xf0]  ;;  %v3060_v21 = vor.u32 %v4432_v8, %v3059_v7 }
  0xa9   :  { %1947 = vmatpush.bf16.msra.mxu3 %v3524_v20  ;;  %v3315_v13 = vld [vmem:[#allocation2 + $0x208] sm:$0xf]  ;;  %v4496_v15 = vld [vmem:[#allocation2 + $0x214] sm:$0xf0]  ;;  %v3188_v25 = vor.u32 %v4464_v12, %v3187_v11 }
  0xaa   :  { %v3443_v16 = vld [vmem:[#allocation2 + $0x308] sm:$0xf]  ;;  %v4528_v17 = vld [vmem:[#allocation2 + $0x314] sm:$0xf0] }
  0xab   :  { %1909 = vmatpush.bf16.msra.mxu0 %v3124_v26  ;;  %v3683_v18 = vld [vmem:[#allocation2 + $0x4e8] sm:$0xf]  ;;  %v4588_v19 = vld [vmem:[#allocation2 + $0x4f4] sm:$0xf0]  ;;  %v3316_v26 = vor.u32 %v4496_v15, %v3315_v13  ;;  %v3444_v29 = vor.u32 %v4528_v17, %v3443_v16 }
  0xac   :  { %1922 = vmatpush.bf16.msra.mxu1 %v3252_v27  ;;  %1935 = vmatpush.bf16.msra.mxu2 %v3380_v28  ;;  %v3811_v20 = vld [vmem:[#allocation2 + $0x5e8] sm:$0xf]  ;;  %v4620_v22 = vld [vmem:[#allocation2 + $0x5f4] sm:$0xf0]  ;;  %v3684_v30 = vor.u32 %v4588_v19, %v3683_v18 }
  0xad   :  { %1948 = vmatpush.bf16.msra.mxu3 %v3508_v35  ;;  %v3939_v23 = vld [vmem:[#allocation2 + $0x6e8] sm:$0xf]  ;;  %v4652_v24 = vld [vmem:[#allocation2 + $0x6f4] sm:$0xf0]  ;;  %v3812_v31 = vor.u32 %v4620_v22, %v3811_v20 }
  0xae   :  { %v4067_v27 = vld [vmem:[#allocation2 + $0x7e8] sm:$0xf]  ;;  %v4684_v28 = vld [vmem:[#allocation2 + $0x7f4] sm:$0xf0]  ;;  %v3940_v35 = vor.u32 %v4652_v24, %v3939_v23 }
  0xaf   :  { %1910 = vmatpush.bf16.msra.mxu0 %v3108_v46  ;;  %v3667_v36 = vld [vmem:[#allocation2 + $0x4c8] sm:$0xf]  ;;  %v4584_v39 = vld [vmem:[#allocation2 + $0x4d4] sm:$0xf0]  ;;  %v4068_v44 = vor.u32 %v4684_v28, %v4067_v27 }
  0xb0   :  { %1923 = vmatpush.bf16.msra.mxu1 %v3236_v47  ;;  %1936 = vmatpush.bf16.msra.mxu2 %v3364_v48  ;;  %v3795_v43 = vld [vmem:[#allocation2 + $0x5c8] sm:$0xf]  ;;  %v4616_v45 = vld [vmem:[#allocation2 + $0x5d4] sm:$0xf0]  ;;  %v3668_v50 = vor.u32 %v4584_v39, %v3667_v36 }
  0xb1   :  { %1949 = vmatpush.bf16.msra.mxu3 %v3492_v52  ;;  %v3923_v46 = vld [vmem:[#allocation2 + $0x6c8] sm:$0xf]  ;;  %v4648_v47 = vld [vmem:[#allocation2 + $0x6d4] sm:$0xf0]  ;;  %v3796_v51 = vor.u32 %v4616_v45, %v3795_v43 }
  0xb2   :  { %v4051_v48 = vld [vmem:[#allocation2 + $0x7c8] sm:$0xf]  ;;  %v4680_v49 = vld [vmem:[#allocation2 + $0x7d4] sm:$0xf0]  ;;  %v3924_v52 = vor.u32 %v4648_v47, %v3923_v46 }
  0xb3   :  { %1911 = vmatpush.bf16.msra.mxu0 %v3092_v58  ;;  %v3651_v53 = vld [vmem:[#allocation2 + $0x4a8] sm:$0xf]  ;;  %v4580_v54 = vld [vmem:[#allocation2 + $0x4b4] sm:$0xf0]  ;;  %v4052_v56 = vor.u32 %v4680_v49, %v4051_v48 }
  0xb4   :  { %1924 = vmatpush.bf16.msra.mxu1 %v3220_v59  ;;  %1937 = vmatpush.bf16.msra.mxu2 %v3348_v60  ;;  %v3779_v55 = vld [vmem:[#allocation2 + $0x5a8] sm:$0xf]  ;;  %v4612_v57 = vld [vmem:[#allocation2 + $0x5b4] sm:$0xf0]  ;;  %v3652_v62 = vor.u32 %v4580_v54, %v3651_v53 }
  0xb5   :  { %1950 = vmatpush.bf16.msra.mxu3 %v3476_v0  ;;  %v3907_v58 = vld [vmem:[#allocation2 + $0x6a8] sm:$0xf]  ;;  %v4644_v59 = vld [vmem:[#allocation2 + $0x6b4] sm:$0xf0]  ;;  %v3780_v63 = vor.u32 %v4612_v57, %v3779_v55 }
  0xb6   :  { %v4035_v60 = vld [vmem:[#allocation2 + $0x7a8] sm:$0xf]  ;;  %v4676_v61 = vld [vmem:[#allocation2 + $0x7b4] sm:$0xf0]  ;;  %v3908_v0 = vor.u32 %v4644_v59, %v3907_v58 }
  0xb7   :  { %1912 = vmatpush.bf16.msra.mxu0 %v3076_v6  ;;  %v3635_v1 = vld [vmem:[#allocation2 + $0x488] sm:$0xf]  ;;  %v4576_v2 = vld [vmem:[#allocation2 + $0x494] sm:$0xf0]  ;;  %v4036_v4 = vor.u32 %v4676_v61, %v4035_v60 }
  0xb8   :  { %1925 = vmatpush.bf16.msra.mxu1 %v3204_v9  ;;  %1938 = vmatpush.bf16.msra.mxu2 %v3332_v10  ;;  %v3763_v3 = vld [vmem:[#allocation2 + $0x588] sm:$0xf]  ;;  %v4608_v5 = vld [vmem:[#allocation2 + $0x594] sm:$0xf0]  ;;  %v3636_v10 = vor.u32 %v4576_v2, %v3635_v1 }
  0xb9   :  { %1951 = vmatpush.bf16.msra.mxu3 %v3460_v14  ;;  %v3891_v6 = vld [vmem:[#allocation2 + $0x688] sm:$0xf]  ;;  %v4640_v7 = vld [vmem:[#allocation2 + $0x694] sm:$0xf0]  ;;  %v3764_v11 = vor.u32 %v4608_v5, %v3763_v3 }
  0xba   :  { %v4019_v8 = vld [vmem:[#allocation2 + $0x788] sm:$0xf]  ;;  %v4672_v9 = vld [vmem:[#allocation2 + $0x794] sm:$0xf0]  ;;  %v3892_v12 = vor.u32 %v4640_v7, %v3891_v6  ;;  %v4458_v6 = vld [vmem:[#allocation2 + $0xec] sm:$0xf] }
  0xbb   :  { %1913 = vmatpush.bf16.msra.mxu0 %v3060_v21  ;;  %v3619_v13 = vld [vmem:[#allocation2 + $0x468] sm:$0xf]  ;;  %v4572_v14 = vld [vmem:[#allocation2 + $0x474] sm:$0xf0]  ;;  %v4020_v16 = vor.u32 %v4672_v9, %v4019_v8  ;;  %v3173_v7 = vld [vmem:[#allocation2 + $0xf8] sm:$0xf0] }
  0xbc   :  { %1926 = vmatpush.bf16.msra.mxu1 %v3188_v25  ;;  %1939 = vmatpush.bf16.msra.mxu2 %v3316_v26  ;;  %v3747_v15 = vld [vmem:[#allocation2 + $0x568] sm:$0xf]  ;;  %v4604_v17 = vld [vmem:[#allocation2 + $0x574] sm:$0xf0]  ;;  %v3620_v22 = vor.u32 %v4572_v14, %v3619_v13  ;;  %v4490_v8 = vld [vmem:[#allocation2 + $0x1ec] sm:$0xf] }
  0xbd   :  { %1952 = vmatpush.bf16.msra.mxu3 %v3444_v29  ;;  %v3875_v18 = vld [vmem:[#allocation2 + $0x668] sm:$0xf]  ;;  %v4636_v19 = vld [vmem:[#allocation2 + $0x674] sm:$0xf0]  ;;  %v3748_v24 = vor.u32 %v4604_v17, %v3747_v15  ;;  %v3429_v13 = vld [vmem:[#allocation2 + $0x2f8] sm:$0xf0] }
  0xbe   :  { %1914 = vmatmul.bf16.vlgmr.msra.gmra.mxu0 %v5063_v34  ;;  %v4003_v20 = vld [vmem:[#allocation2 + $0x768] sm:$0xf]  ;;  %v4668_v21 = vld [vmem:[#allocation2 + $0x774] sm:$0xf0]  ;;  %v3876_v25 = vor.u32 %v4636_v19, %v3875_v18  ;;  %v4554_v17 = vld [vmem:[#allocation2 + $0x3ec] sm:$0xf] }
  0xbf   :  { %1958 = vmatpush.bf16.msrb.mxu0 %v3684_v30  ;;  %1940 = vmatmul.bf16.vlgmr.msra.gmra.mxu2 %v5061_v33  ;;  %v3603_v23 = vld [vmem:[#allocation2 + $0x448] sm:$0xf]  ;;  %v4568_v26 = vld [vmem:[#allocation2 + $0x454] sm:$0xf0]  ;;  %v4004_v29 = vor.u32 %v4668_v21, %v4003_v20  ;;  %v3557_v18 = vld [vmem:[#allocation2 + $0x3f8] sm:$0xf0]  ;;  %v3176_v20 = vor.u32 %v4458_v6, %v3173_v7 }
  0xc0   :  { %1971 = vmatpush.bf16.msrb.mxu1 %v3812_v31  ;;  %1984 = vmatpush.bf16.msrb.mxu2 %v3940_v35  ;;  %v3731_v27 = vld [vmem:[#allocation2 + $0x548] sm:$0xf]  ;;  %v4600_v28 = vld [vmem:[#allocation2 + $0x554] sm:$0xf0]  ;;  %v3604_v43 = vor.u32 %v4568_v26, %v3603_v23  ;;  %v4486_v26 = vld [vmem:[#allocation2 + $0x1cc] sm:$0xf] }
  0xc1   :  { %1997 = vmatpush.bf16.msrb.mxu3 %v4068_v44  ;;  %1927 = vmatmul.bf16.vlgmr.msra.gmra.mxu1 %v5067_v42  ;;  %v3859_v30 = vld [vmem:[#allocation2 + $0x648] sm:$0xf]  ;;  %v4632_v31 = vld [vmem:[#allocation2 + $0x654] sm:$0xf0]  ;;  %v3732_v45 = vor.u32 %v4600_v28, %v3731_v27  ;;  %v3381_v6 = vld [vmem:[#allocation2 + $0x298] sm:$0xf0] }
  0xc2   :  { %1953 = vmatmul.bf16.vlgmr.msra.gmra.mxu3 %v5065_v41  ;;  %v5103_v35 = vld [vmem:[%s5237_s2] sm:$0xf]  ;;  %v3987_v36 = vld [vmem:[#allocation2 + $0x748] sm:$0xf]  ;;  %v3860_v46 = vor.u32 %v4632_v31, %v3859_v30  ;;  %v3285_v30 = vld [vmem:[#allocation2 + $0x1d8] sm:$0xf0] }
  0xc3   :  { %1959 = vmatpush.bf16.msrb.mxu0 %v3668_v50  ;;  %v4664_v39 = vld [vmem:[#allocation2 + $0x754] sm:$0xf0]  ;;  %v3587_v44 = vld [vmem:[#allocation2 + $0x428] sm:$0xf]  ;;  %v410_v49 = vperm.slane %v5103_v35, 0 }
  0xc4   :  { %1972 = vmatpush.bf16.msrb.mxu1 %v3796_v51  ;;  %1985 = vmatpush.bf16.msrb.mxu2 %v3924_v52  ;;  %v4564_v47 = vld [vmem:[#allocation2 + $0x434] sm:$0xf0]  ;;  %v3715_v48 = vld [vmem:[#allocation2 + $0x528] sm:$0xf]  ;;  %v3988_v50 = vor.u32 %v4664_v39, %v3987_v36  ;;  %v4518_v31 = vld [vmem:[#allocation2 + $0x2cc] sm:$0xf] }
  0xc5   :  { %1998 = vmatpush.bf16.msrb.mxu3 %v4052_v56  ;;  %v4596_v51 = vld [vmem:[#allocation2 + $0x534] sm:$0xf0]  ;;  %v3843_v52 = vld [vmem:[#allocation2 + $0x628] sm:$0xf]  ;;  %v3588_v56 = vor.u32 %v4564_v47, %v3587_v44  ;;  %v3413_v36 = vld [vmem:[#allocation2 + $0x2d8] sm:$0xf0]  ;;  %v3288_v47 = vor.u32 %v4486_v26, %v3285_v30 }
  0xc6   :  { %v4628_v53 = vld [vmem:[#allocation2 + $0x634] sm:$0xf0]  ;;  %v3971_v54 = vld [vmem:[#allocation2 + $0x728] sm:$0xf]  ;;  %v3716_v60 = vor.u32 %v4596_v51, %v3715_v48  ;;  %v3541_v44 = vld [vmem:[#allocation2 + $0x3d8] sm:$0xf0]  ;;  %v3416_v48 = vor.u32 %v4518_v31, %v3413_v36 }
  0xc7   :  { %1960 = vmatpush.bf16.msrb.mxu0 %v3652_v62  ;;  %v4660_v55 = vld [vmem:[#allocation2 + $0x734] sm:$0xf0]  ;;  %v3571_v57 = vld [vmem:[#allocation2 + $0x408] sm:$0xf]  ;;  %v3844_v61 = vor.u32 %v4628_v53, %v3843_v52  ;;  %v4482_v51 = vld [vmem:[#allocation2 + $0x1ac] sm:$0xf] }
  0xc8   :  { %1973 = vmatpush.bf16.msrb.mxu1 %v3780_v63  ;;  %1986 = vmatpush.bf16.msrb.mxu2 %v3908_v0  ;;  %v4560_v58 = vld [vmem:[#allocation2 + $0x414] sm:$0xf0]  ;;  %v3699_v62 = vld [vmem:[#allocation2 + $0x508] sm:$0xf]  ;;  %v3972_v2 = vor.u32 %v4660_v55, %v3971_v54  ;;  %v3269_v54 = vld [vmem:[#allocation2 + $0x1b8] sm:$0xf0] }
  0xc9   :  { %1999 = vmatpush.bf16.msrb.mxu3 %v4036_v4  ;;  %v4592_v63 = vld [vmem:[#allocation2 + $0x514] sm:$0xf0]  ;;  %v3827_v0 = vld [vmem:[#allocation2 + $0x608] sm:$0xf]  ;;  %v4514_v55 = vld [vmem:[#allocation2 + $0x2ac] sm:$0xf] }
  0xca   :  { %v4624_v3 = vld [vmem:[#allocation2 + $0x614] sm:$0xf0]  ;;  %v3955_v4 = vld [vmem:[#allocation2 + $0x708] sm:$0xf]  ;;  %v3700_v15 = vor.u32 %v4592_v63, %v3699_v62  ;;  %v4446_v63 = vld [vmem:[#allocation2 + $0x8c] sm:$0xf] }
  0xcb   :  { %1961 = vmatpush.bf16.msrb.mxu0 %v3636_v10  ;;  %v4656_v5 = vld [vmem:[#allocation2 + $0x714] sm:$0xf0]  ;;  %v3572_v10 = vor.u32 %v4560_v58, %v3571_v57  ;;  %v4546_v57 = vld [vmem:[#allocation2 + $0x3ac] sm:$0xf]  ;;  %v3525_v58 = vld [vmem:[#allocation2 + $0x3b8] sm:$0xf0] }
  0xcc   :  { %1974 = vmatpush.bf16.msrb.mxu1 %v3764_v11  ;;  %1987 = vmatpush.bf16.msrb.mxu2 %v3892_v12  ;;  %v3301_v11 = vld [vmem:[#allocation2 + $0x1f8] sm:$0xf0]  ;;  %v4522_v12 = vld [vmem:[#allocation2 + $0x2ec] sm:$0xf]  ;;  %v3956_v19 = vor.u32 %v4656_v5, %v3955_v4 }
  0xcd   :  { %2000 = vmatpush.bf16.msrb.mxu3 %v4020_v16  ;;  %v3828_v16 = vor.u32 %v4624_v3, %v3827_v0  ;;  %v3432_v23 = vor.u32 %v4522_v12, %v3429_v13  ;;  %v3125_v0 = vld [vmem:[#allocation2 + $0x98] sm:$0xf0]  ;;  %v3528_v3 = vor.u32 %v4546_v57, %v3525_v58  ;;  %v4510_v5 = vld [vmem:[#allocation2 + $0x28c] sm:$0xf] }
  0xce   :  { %v1707_v59 = vpop.f32.mrf.mxu0  ;;  %v3253_v4 = vld [vmem:[#allocation2 + $0x198] sm:$0xf0]  ;;  %v4542_v7 = vld [vmem:[#allocation2 + $0x38c] sm:$0xf]  ;;  %v3384_v12 = vor.u32 %v4510_v5, %v3381_v6 }
  0xcf   :  { %1962 = vmatpush.bf16.msrb.mxu0 %v3620_v22  ;;  %v1708_v1 = vadd.f32 %v1707_v59, %v410_v49  ;;  %v1720_v9 = vpop.f32.mrf.mxu1  ;;  %v3304_v22 = vor.u32 %v4490_v8, %v3301_v11  ;;  %v4450_v49 = vld [vmem:[#allocation2 + $0xac] sm:$0xf]  ;;  %v3509_v8 = vld [vmem:[#allocation2 + $0x398] sm:$0xf0] }
  0xd0   :  { %1975 = vmatpush.bf16.msrb.mxu1 %v3748_v24  ;;  %1988 = vmatpush.bf16.msrb.mxu2 %v3876_v25  ;;  %v4454_v24 = vld [vmem:[#allocation2 + $0xcc] sm:$0xf]  ;;  %v3157_v25 = vld [vmem:[#allocation2 + $0xd8] sm:$0xf0] }
  0xd1   :  { %2001 = vmatpush.bf16.msrb.mxu3 %v4004_v29  ;;  %v1721_v14 = vadd.f32 %v1720_v9, %v1708_v1  ;;  %v3560_v29 = vor.u32 %v4554_v17, %v3557_v18  ;;  %v4478_v1 = vld [vmem:[#allocation2 + $0x18c] sm:$0xf]  ;;  %v3128_v9 = vor.u32 %v4446_v63, %v3125_v0  ;;  %v3512_v18 = vor.u32 %v4542_v7, %v3509_v8  ;;  %v3461_v63 = vld [vmem:[#allocation2 + $0x338] sm:$0xf0] }
  0xd2   :  { %v3256_v11 = vor.u32 %v4478_v1, %v3253_v4  ;;  %v4442_v13 = vld [vmem:[#allocation2 + $0x6c] sm:$0xf]  ;;  %v3189_v6 = vld [vmem:[#allocation2 + $0x118] sm:$0xf0] }
  0xd3   :  { %1963 = vmatpush.bf16.msrb.mxu0 %v3604_v43  ;;  %v1733_v21 = vpop.f32.mrf.mxu2  ;;  %v4550_v43 = vld [vmem:[#allocation2 + $0x3cc] sm:$0xf] }
  0xd4   :  { %1976 = vmatpush.bf16.msrb.mxu1 %v3732_v45  ;;  %1989 = vmatpush.bf16.msrb.mxu2 %v3860_v46  ;;  %v1734_v27 = vadd.f32 %v1733_v21, %v1721_v14  ;;  %v1746_v28 = vpop.f32.mrf.mxu3  ;;  %v3160_v46 = vor.u32 %v4454_v24, %v3157_v25  ;;  %v3544_v53 = vor.u32 %v4550_v43, %v3541_v44  ;;  %v3109_v14 = vld [vmem:[#allocation2 + $0x78] sm:$0xf0]  ;;  %v4470_v30 = vld [vmem:[#allocation2 + $0x14c] sm:$0xf] }
  0xd5   :  { %2002 = vmatpush.bf16.msrb.mxu3 %v3988_v50  ;;  %v3141_v50 = vld [vmem:[#allocation2 + $0xb8] sm:$0xf0]  ;;  %v3112_v25 = vor.u32 %v4442_v13, %v3109_v14  ;;  %v4502_v43 = vld [vmem:[#allocation2 + $0x24c] sm:$0xf] }
  0xd6   :  { %v1709_v39 = vpop.f32.mrf.mxu0  ;;  %v1747_v45 = vadd.f32 %v1746_v28, %v1734_v27  ;;  %v3144_v59 = vor.u32 %v4450_v49, %v3141_v50  ;;  %v3365_v21 = vld [vmem:[#allocation2 + $0x278] sm:$0xf0]  ;;  %v4438_v28 = vld [vmem:[#allocation2 + $0x4c] sm:$0xf] }
  0xd7   :  { %1964 = vmatpush.bf16.msrb.mxu0 %v3588_v56  ;;  %v1722_v52 = vpop.f32.mrf.mxu1  ;;  %v3397_v56 = vld [vmem:[#allocation2 + $0x2b8] sm:$0xf0]  ;;  %v4430_v1 = vld [vmem:[#allocation2 + $0xc] sm:$0xf] }
  0xd8   :  { %1977 = vmatpush.bf16.msrb.mxu1 %v3716_v60  ;;  %1990 = vmatpush.bf16.msrb.mxu2 %v3844_v61  ;;  %v3272_v61 = vor.u32 %v4482_v51, %v3269_v54  ;;  %v3400_v62 = vor.u32 %v4514_v55, %v3397_v56  ;;  %v3221_v39 = vld [vmem:[#allocation2 + $0x158] sm:$0xf0]  ;;  %v4434_v54 = vld [vmem:[#allocation2 + $0x2c] sm:$0xf] }
  0xd9   :  { %2003 = vmatpush.bf16.msrb.mxu3 %v3972_v2  ;;  %v3349_v44 = vld [vmem:[#allocation2 + $0x258] sm:$0xf0]  ;;  %v3224_v52 = vor.u32 %v4470_v30, %v3221_v39  ;;  %v4466_v56 = vld [vmem:[#allocation2 + $0x12c] sm:$0xf] }
  0xda   :  { %v3077_v55 = vld [vmem:[#allocation2 + $0x38] sm:$0xf0]  ;;  %v4462_v5 = vld [vmem:[#allocation2 + $0x10c] sm:$0xf] }
  0xdb   :  { %1965 = vmatpush.bf16.msrb.mxu0 %v3572_v10  ;;  %v1735_v60 = vpop.f32.mrf.mxu2  ;;  %v3080_v0 = vor.u32 %v4434_v54, %v3077_v55  ;;  %v4494_v7 = vld [vmem:[#allocation2 + $0x20c] sm:$0xf]  ;;  %v3669_v30 = vld [vmem:[#allocation2 + $0x4d8] sm:$0xf0] }
  0xdc   :  { %1978 = vmatpush.bf16.msrb.mxu1 %v3700_v15  ;;  %1991 = vmatpush.bf16.msrb.mxu2 %v3828_v16  ;;  %v1748_v2 = vpop.f32.mrf.mxu3  ;;  %v4474_v15 = vld [vmem:[#allocation2 + $0x16c] sm:$0xf]  ;;  %v3797_v39 = vld [vmem:[#allocation2 + $0x5d8] sm:$0xf0] }
  0xdd   :  { %2004 = vmatpush.bf16.msrb.mxu3 %v3956_v19  ;;  %v3237_v19 = vld [vmem:[#allocation2 + $0x178] sm:$0xf0]  ;;  %v4498_v60 = vld [vmem:[#allocation2 + $0x22c] sm:$0xf] }
  0xde   :  { %1966 = vmatmul.bf16.vlgmr.msrb.gmra.mxu0 %v5078_v37  ;;  %v3240_v26 = vor.u32 %v4474_v15, %v3237_v19  ;;  %v3061_v2 = vld [vmem:[#allocation2 + $0x18] sm:$0xf0]  ;;  %v4586_v14 = vld [vmem:[#allocation2 + $0x4ec] sm:$0xf] }
  0xdf   :  { %2010 = vmatpush.bf16.msra.mxu0 %v3176_v20  ;;  %1992 = vmatmul.bf16.vlgmr.msrb.gmra.mxu2 %v5076_v32  ;;  %v1759_v10 = vpop.f32.mrf.mxu0  ;;  %v4506_v20 = vld [vmem:[#allocation2 + $0x26c] sm:$0xf]  ;;  %v3685_v15 = vld [vmem:[#allocation2 + $0x4f8] sm:$0xf0] }
  0xe0   :  { %2023 = vmatpush.bf16.msra.mxu1 %v3304_v22  ;;  %2036 = vmatpush.bf16.msra.mxu2 %v3432_v23  ;;  %v1760_v16 = vadd.f32 %v1759_v10, %v1747_v45  ;;  %v1772_v17 = vpop.f32.mrf.mxu1  ;;  %v4538_v22 = vld [vmem:[#allocation2 + $0x36c] sm:$0xf]  ;;  %v3493_v23 = vld [vmem:[#allocation2 + $0x378] sm:$0xf0]  ;;  %v3368_v27 = vor.u32 %v4506_v20, %v3365_v21  ;;  %v3192_v21 = vor.u32 %v4462_v5, %v3189_v6 }
  0xe1   :  { %2049 = vmatpush.bf16.msra.mxu3 %v3560_v29  ;;  %1979 = vmatmul.bf16.vlgmr.msrb.gmra.mxu1 %v5082_v40  ;;  %v3093_v29 = vld [vmem:[#allocation2 + $0x58] sm:$0xf0]  ;;  %v3496_v36 = vor.u32 %v4538_v22, %v3493_v23  ;;  %v4650_v19 = vld [vmem:[#allocation2 + $0x6ec] sm:$0xf] }
  0xe2   :  { %2005 = vmatmul.bf16.vlgmr.msrb.gmra.mxu3 %v5080_v38  ;;  %v1773_v24 = vadd.f32 %v1772_v17, %v1760_v16  ;;  %v3096_v49 = vor.u32 %v4438_v28, %v3093_v29  ;;  %v3317_v10 = vld [vmem:[#allocation2 + $0x218] sm:$0xf0]  ;;  %v4618_v16 = vld [vmem:[#allocation2 + $0x5ec] sm:$0xf]  ;;  %v3064_v17 = vor.u32 %v4430_v1, %v3061_v2 }
  0xe3   :  { %2011 = vmatpush.bf16.msra.mxu0 %v3160_v46  ;;  %v3941_v20 = vld [vmem:[#allocation2 + $0x6f8] sm:$0xf0]  ;;  %v3320_v22 = vor.u32 %v4494_v7, %v3317_v10  ;;  %v4682_v23 = vld [vmem:[#allocation2 + $0x7ec] sm:$0xf] }
  0xe4   :  { %2024 = vmatpush.bf16.msra.mxu1 %v3288_v47  ;;  %2037 = vmatpush.bf16.msra.mxu2 %v3416_v48  ;;  %v1785_v31 = vpop.f32.mrf.mxu2  ;;  %v4534_v47 = vld [vmem:[#allocation2 + $0x34c] sm:$0xf]  ;;  %v3477_v48 = vld [vmem:[#allocation2 + $0x358] sm:$0xf0]  ;;  %v3944_v28 = vor.u32 %v4650_v19, %v3941_v20 }
  0xe5   :  { %2050 = vmatpush.bf16.msra.mxu3 %v3544_v53  ;;  %v1786_v45 = vadd.f32 %v1785_v31, %v1773_v24  ;;  %v1798_v46 = vpop.f32.mrf.mxu3  ;;  %v3352_v53 = vor.u32 %v4502_v43, %v3349_v44  ;;  %v3480_v58 = vor.u32 %v4534_v47, %v3477_v48  ;;  %v4069_v24 = vld [vmem:[#allocation2 + $0x7f8] sm:$0xf0]  ;;  %v4582_v29 = vld [vmem:[#allocation2 + $0x4cc] sm:$0xf] }
  0xe6   :  { %v4614_v31 = vld [vmem:[#allocation2 + $0x5cc] sm:$0xf]  ;;  %v3925_v44 = vld [vmem:[#allocation2 + $0x6d8] sm:$0xf0]  ;;  %v3672_v47 = vor.u32 %v4582_v29, %v3669_v30 }
  0xe7   :  { %2012 = vmatpush.bf16.msra.mxu0 %v3144_v59  ;;  %v5110_v50 = vadd.f32 %v1798_v46, %v1786_v45  ;;  %v1761_v51 = vpop.f32.mrf.mxu0  ;;  %v3205_v59 = vld [vmem:[#allocation2 + $0x138] sm:$0xf0]  ;;  %v4646_v43 = vld [vmem:[#allocation2 + $0x6cc] sm:$0xf]  ;;  %v3800_v48 = vor.u32 %v4614_v31, %v3797_v39 }
  0xe8   :  { %2025 = vmatpush.bf16.msra.mxu1 %v3272_v61  ;;  %2038 = vmatpush.bf16.msra.mxu2 %v3400_v62  ;;  %v1774_v57 = vpop.f32.mrf.mxu1  ;;  %v3333_v61 = vld [vmem:[#allocation2 + $0x238] sm:$0xf0]  ;;  %v4530_v62 = vld [vmem:[#allocation2 + $0x32c] sm:$0xf] }
  0xe9   :  { %2051 = vmatpush.bf16.msra.mxu3 %v3528_v3  ;;  %v3208_v3 = vor.u32 %v4466_v56, %v3205_v59  ;;  %v3336_v4 = vor.u32 %v4498_v60, %v3333_v61  ;;  %v4678_v45 = vld [vmem:[#allocation2 + $0x7cc] sm:$0xf]  ;;  %v4053_v46 = vld [vmem:[#allocation2 + $0x7d8] sm:$0xf0] }
  0xea   :  { %v4578_v51 = vld [vmem:[#allocation2 + $0x4ac] sm:$0xf]  ;;  %v4056_v54 = vor.u32 %v4678_v45, %v4053_v46  ;;  %v3781_v55 = vld [vmem:[#allocation2 + $0x5b8] sm:$0xf0] }
  0xeb   :  { %2013 = vmatpush.bf16.msra.mxu0 %v3128_v9  ;;  %v3464_v9 = vor.u32 %v4530_v62, %v3461_v63  ;;  %v4642_v56 = vld [vmem:[#allocation2 + $0x6ac] sm:$0xf]  ;;  %v3909_v57 = vld [vmem:[#allocation2 + $0x6b8] sm:$0xf0] }
  0xec   :  { %2026 = vmatpush.bf16.msra.mxu1 %v3256_v11  ;;  %2039 = vmatpush.bf16.msra.mxu2 %v3384_v12  ;;  %v1787_v8 = vpop.f32.mrf.mxu2  ;;  %v4526_v11 = vld [vmem:[#allocation2 + $0x30c] sm:$0xf]  ;;  %v3445_v12 = vld [vmem:[#allocation2 + $0x318] sm:$0xf0]  ;;  %v3912_v62 = vor.u32 %v4642_v56, %v3909_v57  ;;  %v411_v56 = vperm.slane %v5103_v35, 1 }
  0xed   :  { %2052 = vmatpush.bf16.msra.mxu3 %v3512_v18  ;;  %v1800_v13 = vpop.f32.mrf.mxu3  ;;  %v3813_v18 = vld [vmem:[#allocation2 + $0x5f8] sm:$0xf0]  ;;  %v4574_v63 = vld [vmem:[#allocation2 + $0x48c] sm:$0xf]  ;;  %v4700_v35 = vld [vmem:[#allocation5 + $0x74] sm:$0xf0] }
  0xee   :  { %v4037_v59 = vld [vmem:[#allocation2 + $0x7b8] sm:$0xf0]  ;;  %v4670_v5 = vld [vmem:[#allocation2 + $0x78c] sm:$0xf] }
  0xef   :  { %2014 = vmatpush.bf16.msra.mxu0 %v3112_v25  ;;  %v3448_v25 = vor.u32 %v4526_v11, %v3445_v12  ;;  %v3765_v2 = vld [vmem:[#allocation2 + $0x598] sm:$0xf0]  ;;  %v4570_v8 = vld [vmem:[#allocation2 + $0x46c] sm:$0xf] }
  0xf0   :  { %2027 = vmatpush.bf16.msra.mxu1 %v3240_v26  ;;  %2040 = vmatpush.bf16.msra.mxu2 %v3368_v27  ;;  %v3688_v26 = vor.u32 %v4586_v14, %v3685_v15  ;;  %v3816_v27 = vor.u32 %v4618_v16, %v3813_v18  ;;  %v4602_v10 = vld [vmem:[#allocation2 + $0x56c] sm:$0xf]  ;;  %v3749_v13 = vld [vmem:[#allocation2 + $0x578] sm:$0xf0] }
  0xf1   :  { %2053 = vmatpush.bf16.msra.mxu3 %v3496_v36  ;;  %v4072_v36 = vor.u32 %v4682_v23, %v4069_v24  ;;  %v4634_v14 = vld [vmem:[#allocation2 + $0x66c] sm:$0xf]  ;;  %v3877_v15 = vld [vmem:[#allocation2 + $0x678] sm:$0xf0]  ;;  %v3752_v19 = vor.u32 %v4602_v10, %v3749_v13 }
  0xf2   :  { %v4666_v16 = vld [vmem:[#allocation2 + $0x76c] sm:$0xf]  ;;  %v3880_v20 = vor.u32 %v4634_v14, %v3877_v15  ;;  %v3989_v31 = vld [vmem:[#allocation2 + $0x758] sm:$0xf0] }
  0xf3   :  { %2015 = vmatpush.bf16.msra.mxu0 %v3096_v49  ;;  %v3928_v49 = vor.u32 %v4646_v43, %v3925_v44  ;;  %v4598_v23 = vld [vmem:[#allocation2 + $0x54c] sm:$0xf]  ;;  %v3589_v46 = vld [vmem:[#allocation2 + $0x438] sm:$0xf0] }
  0xf4   :  { %2028 = vmatpush.bf16.msra.mxu1 %v3224_v52  ;;  %2041 = vmatpush.bf16.msra.mxu2 %v3352_v53  ;;  %v3653_v52 = vld [vmem:[#allocation2 + $0x4b8] sm:$0xf0]  ;;  %v4610_v53 = vld [vmem:[#allocation2 + $0x5ac] sm:$0xf] }
  0xf5   :  { %2054 = vmatpush.bf16.msra.mxu3 %v3480_v58  ;;  %v4674_v58 = vld [vmem:[#allocation2 + $0x7ac] sm:$0xf]  ;;  %v3656_v60 = vor.u32 %v4578_v51, %v3653_v52  ;;  %v3784_v61 = vor.u32 %v4610_v53, %v3781_v55  ;;  %v3717_v51 = vld [vmem:[#allocation2 + $0x538] sm:$0xf0] }
  0xf6   :  { %v4040_v1 = vor.u32 %v4674_v58, %v4037_v59  ;;  %v4662_v30 = vld [vmem:[#allocation2 + $0x74c] sm:$0xf]  ;;  %v3845_v53 = vld [vmem:[#allocation2 + $0x638] sm:$0xf0] }
  0xf7   :  { %2016 = vmatpush.bf16.msra.mxu0 %v3080_v0  ;;  %v3637_v0 = vld [vmem:[#allocation2 + $0x498] sm:$0xf0]  ;;  %v4562_v45 = vld [vmem:[#allocation2 + $0x42c] sm:$0xf] }
  0xf8   :  { %2029 = vmatpush.bf16.msra.mxu1 %v3208_v3  ;;  %2042 = vmatpush.bf16.msra.mxu2 %v3336_v4  ;;  %v4638_v3 = vld [vmem:[#allocation2 + $0x68c] sm:$0xf]  ;;  %v3893_v4 = vld [vmem:[#allocation2 + $0x698] sm:$0xf0]  ;;  %v3592_v57 = vor.u32 %v4562_v45, %v3589_v46  ;;  %v4099_v45 = vld [vmem:[#allocation5 + $0x30] sm:$0xf] }
  0xf9   :  { %2055 = vmatpush.bf16.msra.mxu3 %v3464_v9  ;;  %v3896_v7 = vor.u32 %v4638_v3, %v3893_v4  ;;  %v3621_v9 = vld [vmem:[#allocation2 + $0x478] sm:$0xf0]  ;;  %v4626_v52 = vld [vmem:[#allocation2 + $0x62c] sm:$0xf]  ;;  %v4163_v46 = vld [vmem:[#allocation5 + $0xb0] sm:$0xf] }
  0xfa   :  { %v3624_v18 = vor.u32 %v4570_v8, %v3621_v9  ;;  %v3973_v55 = vld [vmem:[#allocation2 + $0x738] sm:$0xf0]  ;;  %v4558_v58 = vld [vmem:[#allocation2 + $0x40c] sm:$0xf]  ;;  %v4716_v8 = vld [vmem:[#allocation5 + $0xf4] sm:$0xf0] }
  0xfb   :  { %2017 = vmatpush.bf16.msra.mxu0 %v3064_v17  ;;  %v5116_v6 = vpop.f32.mrf.mxu0  ;;  %v4005_v17 = vld [vmem:[#allocation2 + $0x778] sm:$0xf0]  ;;  %v4654_v3 = vld [vmem:[#allocation2 + $0x70c] sm:$0xf] }
  0xfc   :  { %2030 = vmatpush.bf16.msra.mxu1 %v3192_v21  ;;  %2043 = vmatpush.bf16.msra.mxu2 %v3320_v22  ;;  %v4566_v21 = vld [vmem:[#allocation2 + $0x44c] sm:$0xf]  ;;  %v3605_v22 = vld [vmem:[#allocation2 + $0x458] sm:$0xf0] }
  0xfd   :  { %2056 = vmatpush.bf16.msra.mxu3 %v3448_v25  ;;  %v4008_v25 = vor.u32 %v4666_v16, %v4005_v17  ;;  %v4123_v16 = vld [vmem:[#allocation5 + $0x60] sm:$0xf]  ;;  %v4698_v17 = vld [vmem:[#allocation5 + $0x64] sm:$0xf0] }
  0xfe   :  { %2018 = vmatmul.bf16.vlgmr.msra.gmra.mxu0 %v5063_v34  ;;  %v4021_v34 = vld [vmem:[#allocation2 + $0x798] sm:$0xf0]  ;;  %v5118_v11 = vpop.f32.mrf.mxu1 }
  0xff   :  { %2062 = vmatpush.bf16.msrb.mxu0 %v3688_v26  ;;  %2044 = vmatmul.bf16.vlgmr.msra.gmra.mxu2 %v5061_v33  ;;  %v4606_v33 = vld [vmem:[#allocation2 + $0x58c] sm:$0xf]  ;;  %v4024_v12 = vor.u32 %v4670_v5, %v4021_v34  ;;  %v3733_v26 = vld [vmem:[#allocation2 + $0x558] sm:$0xf0]  ;;  %v4131_v34 = vld [vmem:[#allocation5 + $0x70] sm:$0xf] }
 0x100   :  { %2075 = vmatpush.bf16.msrb.mxu1 %v3816_v27  ;;  %2088 = vmatpush.bf16.msrb.mxu2 %v3944_v28  ;;  %v4630_v27 = vld [vmem:[#allocation2 + $0x64c] sm:$0xf]  ;;  %v3861_v28 = vld [vmem:[#allocation2 + $0x658] sm:$0xf0]  ;;  %v3736_v43 = vor.u32 %v4598_v23, %v3733_v26  ;;  %v4132_v13 = vor.u32 %v4700_v35, %v4131_v34  ;;  %v4696_v23 = vld [vmem:[#allocation5 + $0x54] sm:$0xf0] }
 0x101   :  { %2101 = vmatpush.bf16.msrb.mxu3 %v4072_v36  ;;  %2031 = vmatmul.bf16.vlgmr.msra.gmra.mxu1 %v5067_v42  ;;  %v3768_v42 = vor.u32 %v4606_v33, %v3765_v2  ;;  %v3608_v36 = vor.u32 %v4566_v21, %v3605_v22  ;;  %v3864_v44 = vor.u32 %v4630_v27, %v3861_v28  ;;  %v3829_v2 = vld [vmem:[#allocation2 + $0x618] sm:$0xf0]  ;;  %v4115_v22 = vld [vmem:[#allocation5 + $0x50] sm:$0xf] }
 0x102   :  { %2057 = vmatmul.bf16.vlgmr.msra.gmra.mxu3 %v5065_v41  ;;  %v3640_v41 = vor.u32 %v4574_v63, %v3637_v0  ;;  %v5120_v24 = vpop.f32.mrf.mxu2  ;;  %v3701_v63 = vld [vmem:[#allocation2 + $0x518] sm:$0xf0]  ;;  %v4116_v26 = vor.u32 %v4696_v23, %v4115_v22  ;;  %v4147_v34 = vld [vmem:[#allocation5 + $0x90] sm:$0xf]  ;;  %v4715_v22 = vld [vmem:[#allocation5 + $0xf4] sm:$0xf] }
 0x103   :  { %2063 = vmatpush.bf16.msrb.mxu0 %v3672_v47  ;;  %v1813_v39 = vpop.f32.mrf.mxu0  ;;  %v4594_v47 = vld [vmem:[#allocation2 + $0x52c] sm:$0xf]  ;;  %v3957_v5 = vld [vmem:[#allocation2 + $0x718] sm:$0xf0] }
 0x104   :  { %2076 = vmatpush.bf16.msrb.mxu1 %v3800_v48  ;;  %2089 = vmatpush.bf16.msrb.mxu2 %v3928_v49  ;;  %v3992_v49 = vor.u32 %v4662_v30, %v3989_v31  ;;  %v3720_v59 = vor.u32 %v4594_v47, %v3717_v51  ;;  %v4694_v30 = vld [vmem:[#allocation5 + $0x44] sm:$0xf0]  ;;  %v4171_v31 = vld [vmem:[#allocation5 + $0xc0] sm:$0xf]  ;;  %v4732_v39 = vld [vmem:[#allocation5 + $0x174] sm:$0xf0] }
 0x105   :  { %2102 = vmatpush.bf16.msrb.mxu3 %v4056_v54  ;;  %v5122_v29 = vpop.f32.mrf.mxu3  ;;  %v4658_v54 = vld [vmem:[#allocation2 + $0x72c] sm:$0xf]  ;;  %v4730_v51 = vld [vmem:[#allocation5 + $0x164] sm:$0xf0]  ;;  %v4197_v23 = vld [vmem:[#allocation5 + $0xf8] sm:$0xf0] }
 0x106   :  { %v1826_v48 = vpop.f32.mrf.mxu1  ;;  %v3976_v33 = vor.u32 %v4658_v54, %v3973_v55 }
 0x107   :  { %2064 = vmatpush.bf16.msrb.mxu0 %v3656_v60  ;;  %v3848_v60 = vor.u32 %v4626_v52, %v3845_v53 }
 0x108   :  { %2077 = vmatpush.bf16.msrb.mxu1 %v3784_v61  ;;  %2090 = vmatpush.bf16.msrb.mxu2 %v3912_v62  ;;  %v3573_v61 = vld [vmem:[#allocation2 + $0x418] sm:$0xf0]  ;;  %v4590_v62 = vld [vmem:[#allocation2 + $0x50c] sm:$0xf] }
 0x109   :  { %2103 = vmatpush.bf16.msrb.mxu3 %v4040_v1  ;;  %v4622_v1 = vld [vmem:[#allocation2 + $0x60c] sm:$0xf]  ;;  %v3704_v9 = vor.u32 %v4590_v62, %v3701_v63  ;;  %v4243_v62 = vld [vmem:[#allocation5 + $0x150] sm:$0xf]  ;;  %v4728_v63 = vld [vmem:[#allocation5 + $0x154] sm:$0xf0] }
 0x10a   :  { %v1839_v0 = vpop.f32.mrf.mxu2  ;;  %v3832_v10 = vor.u32 %v4622_v1, %v3829_v2 }
 0x10b   :  { %2065 = vmatpush.bf16.msrb.mxu0 %v3640_v41  ;;  %v1812_v41 = vadd.f32 %v5116_v6, %v411_v56  ;;  %v4124_v6 = vor.u32 %v4698_v17, %v4123_v16  ;;  %v4091_v56 = vld [vmem:[#allocation5 + $0x20] sm:$0xf]  ;;  %v4244_v0 = vor.u32 %v4728_v63, %v4243_v62  ;;  %v4702_v16 = vld [vmem:[#allocation5 + $0x84] sm:$0xf0]  ;;  %v4699_v17 = vld [vmem:[#allocation5 + $0x74] sm:$0xf] }
 0x10c   :  { %2078 = vmatpush.bf16.msrb.mxu1 %v3768_v42  ;;  %2091 = vmatpush.bf16.msrb.mxu2 %v3896_v7  ;;  %v3576_v42 = vor.u32 %v4558_v58, %v3573_v61  ;;  %v4195_v7 = vld [vmem:[#allocation5 + $0xf0] sm:$0xf]  ;;  %v4155_v58 = vld [vmem:[#allocation5 + $0xa0] sm:$0xf]  ;;  %v4709_v62 = vld [vmem:[#allocation5 + $0xc4] sm:$0xf] }
 0x10d   :  { %2104 = vmatpush.bf16.msrb.mxu3 %v4024_v12  ;;  %v1852_v4 = vpop.f32.mrf.mxu3  ;;  %v3960_v12 = vor.u32 %v4654_v3, %v3957_v5  ;;  %v4196_v14 = vor.u32 %v4716_v8, %v4195_v7  ;;  %v1825_v15 = vadd.f32 %v5118_v11, %v1812_v41  ;;  %v4179_v11 = vld [vmem:[#allocation5 + $0xd0] sm:$0xf]  ;;  %v4688_v5 = vld [vmem:[#allocation5 + $0x14] sm:$0xf0]  ;;  %v4726_v7 = vld [vmem:[#allocation5 + $0x144] sm:$0xf0] }
 0x10e   :  { %v4083_v4 = vld [vmem:[#allocation5 + $0x10] sm:$0xf]  ;;  %v4704_v41 = vld [vmem:[#allocation5 + $0x94] sm:$0xf0]  ;;  %v4173_v63 = vld [vmem:[#allocation5 + $0xc8] sm:$0xf0] }
 0x10f   :  { %2066 = vmatpush.bf16.msrb.mxu0 %v3624_v18  ;;  %v4187_v18 = vld [vmem:[#allocation5 + $0xe0] sm:$0xf]  ;;  %v1838_v21 = vadd.f32 %v5120_v24, %v1825_v15  ;;  %v4710_v24 = vld [vmem:[#allocation5 + $0xc4] sm:$0xf0] }
 0x110   :  { %2079 = vmatpush.bf16.msrb.mxu1 %v3752_v19  ;;  %2092 = vmatpush.bf16.msrb.mxu2 %v3880_v20  ;;  %v4714_v19 = vld [vmem:[#allocation5 + $0xe4] sm:$0xf0]  ;;  %v4139_v15 = vld [vmem:[#allocation5 + $0x80] sm:$0xf] }
 0x111   :  { %2105 = vmatpush.bf16.msrb.mxu3 %v4008_v25  ;;  %v4188_v20 = vor.u32 %v4714_v19, %v4187_v18  ;;  %v4712_v25 = vld [vmem:[#allocation5 + $0xd4] sm:$0xf0]  ;;  %v1851_v27 = vadd.f32 %v5122_v29, %v1838_v21  ;;  %v4133_v19 = vld [vmem:[#allocation5 + $0x78] sm:$0xf0] }
 0x112   :  { %v4180_v28 = vor.u32 %v4712_v25, %v4179_v11  ;;  %v4708_v29 = vld [vmem:[#allocation5 + $0xb4] sm:$0xf0] }
 0x113   :  { %2067 = vmatpush.bf16.msrb.mxu0 %v3608_v36  ;;  %v4259_v36 = vld [vmem:[#allocation5 + $0x170] sm:$0xf]  ;;  %v4164_v55 = vor.u32 %v4708_v29, %v4163_v46  ;;  %v4724_v21 = vld [vmem:[#allocation5 + $0x134] sm:$0xf0]  ;;  %v4117_v29 = vld [vmem:[#allocation5 + $0x58] sm:$0xf0] }
 0x114   :  { %2080 = vmatpush.bf16.msrb.mxu1 %v3736_v43  ;;  %2093 = vmatpush.bf16.msrb.mxu2 %v3864_v44  ;;  %v4260_v43 = vor.u32 %v4732_v39, %v4259_v36  ;;  %v4172_v44 = vor.u32 %v4710_v24, %v4171_v31  ;;  %v4200_v31 = vor.u32 %v4715_v22, %v4197_v23  ;;  %v4125_v24 = vld [vmem:[#allocation5 + $0x68] sm:$0xf0]  ;;  %v4219_v36 = vld [vmem:[#allocation5 + $0x120] sm:$0xf]  ;;  %v4722_v39 = vld [vmem:[#allocation5 + $0x124] sm:$0xf0] }
 0x115   :  { %2106 = vmatpush.bf16.msrb.mxu3 %v3992_v49  ;;  %v4251_v49 = vld [vmem:[#allocation5 + $0x160] sm:$0xf]  ;;  %v4720_v46 = vld [vmem:[#allocation5 + $0x114] sm:$0xf0]  ;;  %v4085_v22 = vld [vmem:[#allocation5 + $0x18] sm:$0xf0] }
 0x116   :  { %v4252_v52 = vor.u32 %v4730_v51, %v4251_v49  ;;  %v4711_v49 = vld [vmem:[#allocation5 + $0xd4] sm:$0xf] }
 0x117   :  { %2068 = vmatpush.bf16.msrb.mxu0 %v3592_v57  ;;  %v4690_v57 = vld [vmem:[#allocation5 + $0x24] sm:$0xf0]  ;;  %v4703_v23 = vld [vmem:[#allocation5 + $0x94] sm:$0xf] }
 0x118   :  { %2081 = vmatpush.bf16.msrb.mxu1 %v3720_v59  ;;  %2094 = vmatpush.bf16.msrb.mxu2 %v3848_v60  ;;  %v4706_v60 = vld [vmem:[#allocation5 + $0xa4] sm:$0xf0] }
 0x119   :  { %2107 = vmatpush.bf16.msrb.mxu3 %v3976_v33  ;;  %v4092_v33 = vor.u32 %v4690_v57, %v4091_v56  ;;  %v4156_v3 = vor.u32 %v4706_v60, %v4155_v58  ;;  %v4261_v56 = vld [vmem:[#allocation5 + $0x178] sm:$0xf0]  ;;  %v4109_v60 = vld [vmem:[#allocation5 + $0x48] sm:$0xf0] }
 0x11b   :  { %2069 = vmatpush.bf16.msrb.mxu0 %v3576_v42  ;;  %v4235_v42 = vld [vmem:[#allocation5 + $0x140] sm:$0xf] }
 0x11c   :  { %2082 = vmatpush.bf16.msrb.mxu1 %v3704_v9  ;;  %2095 = vmatpush.bf16.msrb.mxu2 %v3832_v10  ;;  %v4236_v8 = vor.u32 %v4726_v7, %v4235_v42  ;;  %v4084_v10 = vor.u32 %v4688_v5, %v4083_v4  ;;  %v4707_v4 = vld [vmem:[#allocation5 + $0xb4] sm:$0xf]  ;;  %v4253_v42 = vld [vmem:[#allocation5 + $0x168] sm:$0xf0] }
 0x11d   :  { %2108 = vmatpush.bf16.msrb.mxu3 %v3960_v12  ;;  %v4075_v12 = vld [vmem:[#allocation5] sm:$0xf] }
 0x11e   :  { %2070 = vmatmul.bf16.vlgmr.msrb.gmra.mxu0 %v5078_v37  ;;  %v4107_v37 = vld [vmem:[#allocation5 + $0x40] sm:$0xf]  ;;  %v1876_v48 = vpop.f32.mrf.mxu1 }
 0x11f   :  { %2512 = vmatpush.bf16.msra.mxu0 %v4132_v13  ;;  %2083 = vmatmul.bf16.vlgmr.msrb.gmra.mxu1 %v5082_v40  ;;  %v4108_v40 = vor.u32 %v4694_v30, %v4107_v37  ;;  %v4686_v13 = vld [vmem:[#allocation5 + $0x4] sm:$0xf0]  ;;  %v4136_v37 = vor.u32 %v4699_v17, %v4133_v19  ;;  %v4697_v30 = vld [vmem:[#allocation5 + $0x64] sm:$0xf]  ;;  %v4245_v17 = vld [vmem:[#allocation5 + $0x158] sm:$0xf0] }
 0x120   :  { %2525 = vmatpush.bf16.msra.mxu1 %v4196_v14  ;;  %2096 = vmatmul.bf16.vlgmr.msrb.gmra.mxu2 %v5076_v32  ;;  %v1863_v32 = vpop.f32.mrf.mxu0  ;;  %v4148_v14 = vor.u32 %v4704_v41, %v4147_v34  ;;  %v4165_v34 = vld [vmem:[#allocation5 + $0xb8] sm:$0xf0]  ;;  %v4729_v41 = vld [vmem:[#allocation5 + $0x164] sm:$0xf] }
 0x121   :  { %2109 = vmatmul.bf16.vlgmr.msrb.gmra.mxu3 %v5080_v38  ;;  %v4692_v38 = vld [vmem:[#allocation5 + $0x34] sm:$0xf0]  ;;  %v1864_v47 = vadd.f32 %v1863_v32, %v1851_v27  ;;  %2538 = vmatpush.bf16.msra.mxu2 %v4260_v43  ;;  %v2114_v27 = vmax.f32 %v5110_v50, 0.0  ;;  %v4713_v43 = vld [vmem:[#allocation5 + $0xe4] sm:$0xf]  ;;  %v4220_v32 = vor.u32 %v4722_v39, %v4219_v36  ;;  %v4128_v50 = vor.u32 %v4697_v30, %v4125_v24 }
 0x122   :  { %v4100_v53 = vor.u32 %v4692_v38, %v4099_v45  ;;  %v1889_v59 = vpop.f32.mrf.mxu2  ;;  %v4211_v38 = vld [vmem:[#allocation5 + $0x110] sm:$0xf]  ;;  %v4256_v7 = vor.u32 %v4729_v41, %v4253_v42  ;;  %v4685_v36 = vld [vmem:[#allocation5 + $0x4] sm:$0xf] }
 0x123   :  { %2513 = vmatpush.bf16.msra.mxu0 %v4124_v6  ;;  %v1877_v54 = vadd.f32 %v1876_v48, %v1864_v47  ;;  %v5136_v45 = vpack.c.bf16 %v2114_v27, %v2114_v27  ;;  %v4695_v48 = vld [vmem:[#allocation5 + $0x54] sm:$0xf]  ;;  %v4212_v51 = vor.u32 %v4720_v46, %v4211_v38  ;;  %v4725_v27 = vld [vmem:[#allocation5 + $0x144] sm:$0xf]  ;;  %v4141_v38 = vld [vmem:[#allocation5 + $0x88] sm:$0xf0] }
 0x124   :  { %2526 = vmatpush.bf16.msra.mxu1 %v4188_v20  ;;  %v4227_v20 = vld [vmem:[#allocation5 + $0x130] sm:$0xf]  ;;  %v4120_v57 = vor.u32 %v4695_v48, %v4117_v29  ;;  %v4721_v29 = vld [vmem:[#allocation5 + $0x124] sm:$0xf] }
 0x125   :  { %2539 = vmatpush.bf16.msra.mxu2 %v4252_v52  ;;  %v1902_v61 = vpop.f32.mrf.mxu3  ;;  %v1890_v1 = vadd.f32 %v1889_v59, %v1877_v54  ;;  %v4228_v11 = vor.u32 %v4724_v21, %v4227_v20  ;;  %v4181_v52 = vld [vmem:[#allocation5 + $0xd8] sm:$0xf0]  ;;  %v4718_v54 = vld [vmem:[#allocation5 + $0x104] sm:$0xf0]  ;;  %v4693_v59 = vld [vmem:[#allocation5 + $0x44] sm:$0xf] }
 0x126   :  { %v1878_v35 = vpop.f32.mrf.mxu1  ;;  %v4184_v58 = vor.u32 %v4711_v49, %v4181_v52  ;;  %v4687_v21 = vld [vmem:[#allocation5 + $0x14] sm:$0xf]  ;;  %v4221_v49 = vld [vmem:[#allocation5 + $0x128] sm:$0xf0] }
 0x127   :  { %2514 = vmatpush.bf16.msra.mxu0 %v4116_v26  ;;  %v1903_v9 = vadd.f32 %v1902_v61, %v1890_v1  ;;  %v4076_v26 = vor.u32 %v4686_v13, %v4075_v12  ;;  %v4176_v1 = vor.u32 %v4709_v62, %v4173_v63  ;;  %v4093_v12 = vld [vmem:[#allocation5 + $0x28] sm:$0xf0]  ;;  %v4705_v13 = vld [vmem:[#allocation5 + $0xa4] sm:$0xf]  ;;  %v4088_v30 = vor.u32 %v4687_v21, %v4085_v22  ;;  %v4738_v21 = vld [vmem:[#allocation5 + $0x1a4] sm:$0xf0] }
 0x128   :  { %2527 = vmatpush.bf16.msra.mxu1 %v4180_v28  ;;  %v1865_v2 = vpop.f32.mrf.mxu0  ;;  %v4140_v28 = vor.u32 %v4702_v16, %v4139_v15  ;;  %v4727_v16 = vld [vmem:[#allocation5 + $0x154] sm:$0xf]  ;;  %v4717_v62 = vld [vmem:[#allocation5 + $0x104] sm:$0xf]  ;;  %v4205_v63 = vld [vmem:[#allocation5 + $0x108] sm:$0xf0] }
 0x129   :  { %2540 = vmatpush.bf16.msra.mxu2 %v4244_v0  ;;  %v2115_v25 = vmax.f32 %v1903_v9, 0.0  ;;  %v4691_v2 = vld [vmem:[#allocation5 + $0x34] sm:$0xf]  ;;  %v4168_v9 = vor.u32 %v4707_v4, %v4165_v34  ;;  %v4248_v19 = vor.u32 %v4727_v16, %v4245_v17  ;;  %v4744_v34 = vld [vmem:[#allocation5 + $0x1d4] sm:$0xf0] }
 0x12a   :  { %v1891_v18 = vpop.f32.mrf.mxu2 }
 0x12b   :  { %2515 = vmatpush.bf16.msra.mxu0 %v4108_v40  ;;  %v4189_v40 = vld [vmem:[#allocation5 + $0xe8] sm:$0xf0] }
 0x12c   :  { %2528 = vmatpush.bf16.msra.mxu1 %v4172_v44  ;;  %v5134_v44 = vpack.c.bf16 %v2115_v25, %v2115_v25  ;;  %v4192_v47 = vor.u32 %v4713_v43, %v4189_v40  ;;  %v4149_v25 = vld [vmem:[#allocation5 + $0x98] sm:$0xf0]  ;;  %v4077_v43 = vld [vmem:[#allocation5 + $0x8] sm:$0xf0]  ;;  %v4723_v40 = vld [vmem:[#allocation5 + $0x134] sm:$0xf] }
 0x12d   :  { %2541 = vmatpush.bf16.msra.mxu2 %v4236_v8  ;;  %v1904_v6 = vpop.f32.mrf.mxu3  ;;  %v4152_v39 = vor.u32 %v4703_v23, %v4149_v25 }
 0x12f   :  { %2516 = vmatpush.bf16.msra.mxu0 %v4100_v53  ;;  %v4203_v53 = vld [vmem:[#allocation5 + $0x100] sm:$0xf] }
 0x130   :  { %2529 = vmatpush.bf16.msra.mxu1 %v4164_v55  ;;  %v4731_v55 = vld [vmem:[#allocation5 + $0x174] sm:$0xf]  ;;  %v4204_v61 = vor.u32 %v4718_v54, %v4203_v53  ;;  %v4080_v53 = vor.u32 %v4685_v36, %v4077_v43  ;;  %v4748_v54 = vld [vmem:[#allocation5 + $0x1f4] sm:$0xf0] }
 0x131   :  { %2542 = vmatpush.bf16.msra.mxu2 %v4228_v11  ;;  %v4264_v0 = vor.u32 %v4731_v55, %v4261_v56  ;;  %v4747_v36 = vld [vmem:[#allocation5 + $0x1f4] sm:$0xf] }
 0x133   :  { %2517 = vmatpush.bf16.msra.mxu0 %v4092_v33  ;;  %v4112_v33 = vor.u32 %v4693_v59, %v4109_v60  ;;  %v4213_v59 = vld [vmem:[#allocation5 + $0x118] sm:$0xf0] }
 0x134   :  { %2530 = vmatpush.bf16.msra.mxu1 %v4156_v3  ;;  %v4101_v3 = vld [vmem:[#allocation5 + $0x38] sm:$0xf0] }
 0x135   :  { %2543 = vmatpush.bf16.msra.mxu2 %v4220_v32  ;;  %v4104_v8 = vor.u32 %v4691_v2, %v4101_v3  ;;  %v4229_v32 = vld [vmem:[#allocation5 + $0x138] sm:$0xf0]  ;;  %v4315_v2 = vld [vmem:[#allocation5 + $0x1e0] sm:$0xf]  ;;  %v4746_v3 = vld [vmem:[#allocation5 + $0x1e4] sm:$0xf0] }
 0x136   :  { %v4316_v4 = vor.u32 %v4746_v3, %v4315_v2  ;;  %v4277_v2 = vld [vmem:[#allocation5 + $0x198] sm:$0xf0] }
 0x137   :  { %2518 = vmatpush.bf16.msra.mxu0 %v4084_v10  ;;  %v4689_v10 = vld [vmem:[#allocation5 + $0x24] sm:$0xf] }
 0x138   :  { %2531 = vmatpush.bf16.msra.mxu1 %v4148_v14  ;;  %v4157_v14 = vld [vmem:[#allocation5 + $0xa8] sm:$0xf0]  ;;  %v4096_v6 = vor.u32 %v4689_v10, %v4093_v12 }
 0x139   :  { %2544 = vmatpush.bf16.msra.mxu2 %v4212_v51  ;;  %v4160_v20 = vor.u32 %v4705_v13, %v4157_v14  ;;  %v4323_v51 = vld [vmem:[#allocation5 + $0x1f0] sm:$0xf] }
 0x13a   :  { %v4324_v56 = vor.u32 %v4748_v54, %v4323_v51  ;;  %v4291_v14 = vld [vmem:[#allocation5 + $0x1b0] sm:$0xf] }
 0x13b   :  { %2519 = vmatpush.bf16.msra.mxu0 %v4076_v26  ;;  %v1915_v5 = vpop.f32.mrf.mxu0 }
 0x13c   :  { %2532 = vmatpush.bf16.msra.mxu1 %v4140_v28  ;;  %v4237_v28 = vld [vmem:[#allocation5 + $0x148] sm:$0xf0]  ;;  %2551 = vmatpush.bf16.msra.mxu3 %v4324_v56 }
 0x13d   :  { %2545 = vmatpush.bf16.msra.mxu2 %v4204_v61 }
 0x13e   :  { %2520 = vmatmul.bf16.vlgmr.msra.gmra.mxu0 %v5136_v45  ;;  %v5140_v35 = vpop.f32.mrf.mxu1 }
 0x13f   :  { %2564 = vmatpush.bf16.msrb.mxu0 %v4136_v37  ;;  %2533 = vmatmul.bf16.vlgmr.msra.gmra.mxu1 %v5134_v44  ;;  %v4240_v37 = vor.u32 %v4725_v27, %v4237_v28  ;;  %v4736_v27 = vld [vmem:[#allocation5 + $0x194] sm:$0xf0] }
 0x140   :  { %2577 = vmatpush.bf16.msrb.mxu1 %v4200_v31  ;;  %v5145_v31 = vld [vmem:[%s5237_s2] sm:$0xf]  ;;  %2552 = vmatpush.bf16.msra.mxu3 %v4316_v4 }
 0x141   :  { %2590 = vmatpush.bf16.msrb.mxu2 %v4264_v0  ;;  %v412_v24 = vperm.slane %v5145_v31, 2 }
 0x142   :  { %v1941_v15 = vpop.f32.mrf.mxu2 }
 0x143   :  { %2565 = vmatpush.bf16.msrb.mxu0 %v4128_v50  ;;  %v1917_v11 = vpop.f32.mrf.mxu0  ;;  %v4701_v50 = vld [vmem:[#allocation5 + $0x84] sm:$0xf]  ;;  %v1916_v52 = vadd.f32 %v1915_v5, %v412_v24  ;;  %v4307_v5 = vld [vmem:[#allocation5 + $0x1d0] sm:$0xf] }
 0x144   :  { %2578 = vmatpush.bf16.msrb.mxu1 %v4192_v47  ;;  %v4232_v47 = vor.u32 %v4723_v40, %v4229_v32  ;;  %v4144_v55 = vor.u32 %v4701_v50, %v4141_v38  ;;  %v4745_v40 = vld [vmem:[#allocation5 + $0x1e4] sm:$0xf]  ;;  %v4317_v32 = vld [vmem:[#allocation5 + $0x1e8] sm:$0xf0] }
 0x145   :  { %2591 = vmatpush.bf16.msrb.mxu2 %v4256_v7  ;;  %v1954_v18 = vpop.f32.mrf.mxu3  ;;  %v1929_v60 = vadd.f32 %v5140_v35, %v1916_v52  ;;  %v4308_v7 = vor.u32 %v4744_v34, %v4307_v5  ;;  %v4320_v38 = vor.u32 %v4745_v40, %v4317_v32  ;;  %v4741_v52 = vld [vmem:[#allocation5 + $0x1c4] sm:$0xf]  ;;  %v4269_v34 = vld [vmem:[#allocation5 + $0x188] sm:$0xf0]  ;;  %v4764_v40 = vld [vmem:[%s5240_s5 + $0x78] sm:$0xff] }
 0x146   :  { %v1930_v26 = vpop.f32.mrf.mxu1  ;;  %v4733_v5 = vld [vmem:[#allocation5 + $0x184] sm:$0xf]  ;;  %v4755_v32 = vld [vmem:[%s5240_s5 + $0x30] sm:$0xff] }
 0x147   :  { %2566 = vmatpush.bf16.msrb.mxu0 %v4120_v57  ;;  %v4224_v57 = vor.u32 %v4721_v29, %v4221_v49  ;;  %v1942_v0 = vadd.f32 %v1941_v15, %v1929_v60  ;;  %2553 = vmatpush.bf16.msra.mxu3 %v4308_v7  ;;  %v4740_v15 = vld [vmem:[#allocation5 + $0x1b4] sm:$0xf0]  ;;  %v4275_v26 = vld [vmem:[#allocation5 + $0x190] sm:$0xf] }
 0x148   :  { %2579 = vmatpush.bf16.msrb.mxu1 %v4184_v58  ;;  %v4719_v58 = vld [vmem:[#allocation5 + $0x114] sm:$0xf]  ;;  %v4276_v28 = vor.u32 %v4736_v27, %v4275_v26 }
 0x149   :  { %2592 = vmatpush.bf16.msrb.mxu2 %v4248_v19  ;;  %v4216_v61 = vor.u32 %v4719_v58, %v4213_v59  ;;  %v4292_v19 = vor.u32 %v4740_v15, %v4291_v14  ;;  %v4293_v58 = vld [vmem:[#allocation5 + $0x1b8] sm:$0xf0]  ;;  %v413_v59 = vperm.slane %v5145_v31, 3 }
 0x14a   :  { %v1943_v46 = vpop.f32.mrf.mxu2 }
 0x14b   :  { %2567 = vmatpush.bf16.msrb.mxu0 %v4112_v33  ;;  %v4208_v33 = vor.u32 %v4717_v62, %v4205_v63  ;;  %v4285_v62 = vld [vmem:[#allocation5 + $0x1a8] sm:$0xf0] }
 0x14c   :  { %2580 = vmatpush.bf16.msrb.mxu1 %v4176_v1  ;;  %v1955_v1 = vadd.f32 %v1954_v18, %v1942_v0 }
 0x14d   :  { %2593 = vmatpush.bf16.msrb.mxu2 %v4240_v37  ;;  %v1956_v48 = vpop.f32.mrf.mxu3  ;;  %v4267_v37 = vld [vmem:[#allocation5 + $0x180] sm:$0xf] }
 0x14e   :  { %v4309_v48 = vld [vmem:[#allocation5 + $0x1d8] sm:$0xf0] }
 0x14f   :  { %2568 = vmatpush.bf16.msrb.mxu0 %v4104_v8  ;;  %v4299_v8 = vld [vmem:[#allocation5 + $0x1c0] sm:$0xf] }
 0x150   :  { %2581 = vmatpush.bf16.msrb.mxu1 %v4168_v9  ;;  %v4742_v9 = vld [vmem:[#allocation5 + $0x1c4] sm:$0xf0] }
 0x151   :  { %2594 = vmatpush.bf16.msrb.mxu2 %v4232_v47  ;;  %v4743_v47 = vld [vmem:[#allocation5 + $0x1d4] sm:$0xf] }
 0x152   :  { %v4312_v29 = vor.u32 %v4743_v47, %v4309_v48  ;;  %v4753_v47 = vld [vmem:[%s5240_s5 + $0x20] sm:$0xff]  ;;  %v4752_v48 = vld [vmem:[%s5240_s5 + $0x18] sm:$0xff] }
 0x153   :  { %2569 = vmatpush.bf16.msrb.mxu0 %v4096_v6 }
 0x154   :  { %2582 = vmatpush.bf16.msrb.mxu1 %v4160_v20  ;;  %v4283_v20 = vld [vmem:[#allocation5 + $0x1a0] sm:$0xf] }
 0x155   :  { %2595 = vmatpush.bf16.msrb.mxu2 %v4224_v57  ;;  %v4284_v11 = vor.u32 %v4738_v21, %v4283_v20  ;;  %v4739_v57 = vld [vmem:[#allocation5 + $0x1b4] sm:$0xf] }
 0x156   :  { %v4296_v60 = vor.u32 %v4739_v57, %v4293_v58  ;;  %v4760_v57 = vld [vmem:[%s5240_s5 + $0x58] sm:$0xff]  ;;  %v4759_v58 = vld [vmem:[%s5240_s5 + $0x50] sm:$0xff] }
 0x157   :  { %2570 = vmatpush.bf16.msrb.mxu0 %v4088_v30  ;;  %v4734_v30 = vld [vmem:[#allocation5 + $0x184] sm:$0xf0] }
 0x158   :  { %2583 = vmatpush.bf16.msrb.mxu1 %v4152_v39  ;;  %v4268_v24 = vor.u32 %v4734_v30, %v4267_v37  ;;  %v4325_v39 = vld [vmem:[#allocation5 + $0x1f8] sm:$0xf0] }
 0x159   :  { %2596 = vmatpush.bf16.msrb.mxu2 %v4216_v61  ;;  %v4328_v43 = vor.u32 %v4747_v36, %v4325_v39  ;;  %v4737_v61 = vld [vmem:[#allocation5 + $0x1a4] sm:$0xf] }
 0x15b   :  { %2571 = vmatpush.bf16.msrb.mxu0 %v4080_v53  ;;  %v1967_v35 = vpop.f32.mrf.mxu0  ;;  %v4301_v53 = vld [vmem:[#allocation5 + $0x1c8] sm:$0xf0] }
 0x15c   :  { %2584 = vmatpush.bf16.msrb.mxu1 %v4144_v55  ;;  %v1968_v41 = vadd.f32 %v1967_v35, %v1955_v1  ;;  %v4304_v55 = vor.u32 %v4741_v52, %v4301_v53  ;;  %v4735_v1 = vld [vmem:[#allocation5 + $0x194] sm:$0xf]  ;;  %v4750_v53 = vld [vmem:[%s5240_s5 + $0x8] sm:$0xff] }
 0x15d   :  { %2597 = vmatpush.bf16.msrb.mxu2 %v4208_v33  ;;  %v4288_v33 = vor.u32 %v4737_v61, %v4285_v62  ;;  %v4280_v4 = vor.u32 %v4735_v1, %v4277_v2 }
 0x15e   :  { %2572 = vmatmul.bf16.vlgmr.msrb.gmra.mxu0 %v5136_v45  ;;  %v1980_v42 = vpop.f32.mrf.mxu1 }
 0x15f   :  { %2585 = vmatmul.bf16.vlgmr.msrb.gmra.mxu1 %v5134_v44  ;;  %v1981_v45 = vadd.f32 %v1980_v42, %v1968_v41  ;;  %v4300_v44 = vor.u32 %v4742_v9, %v4299_v8  ;;  %v4272_v41 = vor.u32 %v4733_v5, %v4269_v34 }
 0x160   :  { %2763 = vmatpush.bf16.msra.mxu1 %v4764_v40 }
 0x161   :  { %2554 = vmatpush.bf16.msra.mxu3 %v4300_v44 }
 0x162   :  { %v1993_v10 = vpop.f32.mrf.mxu2 }
 0x163   :  { %v1994_v12 = vadd.f32 %v1993_v10, %v1981_v45  ;;  %v1969_v17 = vpop.f32.mrf.mxu0 }
 0x165   :  { %v2006_v13 = vpop.f32.mrf.mxu3  ;;  %2555 = vmatpush.bf16.msra.mxu3 %v4292_v19 }
 0x166   :  { %v2007_v16 = vadd.f32 %v2006_v13, %v1994_v12  ;;  %v1982_v18 = vpop.f32.mrf.mxu1 }
 0x168   :  { %v2116_v6 = vmax.f32 %v2007_v16, 0.0 }
 0x169   :  { %2556 = vmatpush.bf16.msra.mxu3 %v4284_v11 }
 0x16a   :  { %v2120_v22 = vpack.c.bf16 %v2116_v6, %v2116_v6  ;;  %v1995_v23 = vpop.f32.mrf.mxu2  ;;  %v2186_v6 = vld [vmem:[%s5239_s4] sm:$0x3] }
 0x16b   :  { %v2188_v20 = vperm.slane %v2186_v6, 0  ;;  %v2189_v27 = vperm.slane %v2186_v6, 1 }
 0x16c   :  { %2546 = vmatmul.bf16.vlgmr.msra.gmra.mxu2 %v2120_v22 }
 0x16d   :  { %v2008_v25 = vpop.f32.mrf.mxu3  ;;  %2557 = vmatpush.bf16.msra.mxu3 %v4276_v28 }
 0x171   :  { %2558 = vmatpush.bf16.msra.mxu3 %v4268_v24 }
 0x175   :  { %2603 = vmatpush.bf16.msrb.mxu3 %v4328_v43  ;;  %v4756_v43 = vld [vmem:[%s5240_s5 + $0x38] sm:$0xff] }
 0x176   :  { %2750 = vmatpush.bf16.msra.mxu0 %v4756_v43 }
 0x179   :  { %2604 = vmatpush.bf16.msrb.mxu3 %v4320_v38  ;;  %v4754_v38 = vld [vmem:[%s5240_s5 + $0x28] sm:$0xff] }
 0x17a   :  { %2751 = vmatpush.bf16.msra.mxu0 %v4755_v32 }
 0x17b   :  { %v2019_v50 = vpop.f32.mrf.mxu0 }
 0x17c   :  { %2598 = vmatmul.bf16.vlgmr.msrb.gmra.mxu2 %v2120_v22  ;;  %v2020_v3 = vadd.f32 %v2019_v50, %v413_v59  ;;  %v4763_v50 = vld [vmem:[%s5240_s5 + $0x70] sm:$0xff]  ;;  %v4758_v59 = vld [vmem:[%s5240_s5 + $0x48] sm:$0xff] }
 0x17d   :  { %2605 = vmatpush.bf16.msrb.mxu3 %v4312_v29  ;;  %2764 = vmatpush.bf16.msra.mxu1 %v4763_v50 }
 0x17e   :  { %v2032_v46 = vpop.f32.mrf.mxu1  ;;  %2752 = vmatpush.bf16.msra.mxu0 %v4754_v38  ;;  %v4793_v38 = vld [vmem:[%s5241_s6 + $0x1] ss:$0 sm:$0xff] }
 0x17f   :  { %v2033_v35 = vadd.f32 %v2032_v46, %v2020_v3 }
 0x181   :  { %2606 = vmatpush.bf16.msrb.mxu3 %v4304_v55  ;;  %v4749_v55 = vld [vmem:[%s5240_s5] sm:$0xff] }
 0x182   :  { %v2045_v49 = vpop.f32.mrf.mxu2  ;;  %2753 = vmatpush.bf16.msra.mxu0 %v4753_v47  ;;  %v4794_v47 = vld [vmem:[%s5241_s6 + $0x2] ss:$0 sm:$0xff] }
 0x183   :  { %v2021_v54 = vpop.f32.mrf.mxu0  ;;  %v2046_v42 = vadd.f32 %v2045_v49, %v2033_v35  ;;  %v4751_v49 = vld [vmem:[%s5240_s5 + $0x10] sm:$0xff] }
 0x184   :  { %v4762_v54 = vld [vmem:[%s5240_s5 + $0x68] sm:$0xff] }
 0x185   :  { %v2058_v51 = vpop.f32.mrf.mxu3  ;;  %2607 = vmatpush.bf16.msrb.mxu3 %v4296_v60  ;;  %2765 = vmatpush.bf16.msra.mxu1 %v4762_v54  ;;  %v4757_v60 = vld [vmem:[%s5240_s5 + $0x40] sm:$0xff] }
 0x186   :  { %v2034_v56 = vpop.f32.mrf.mxu1  ;;  %v2059_v31 = vadd.f32 %v2058_v51, %v2046_v42  ;;  %2754 = vmatpush.bf16.msra.mxu0 %v4752_v48  ;;  %v2788_v42 = vld [vmem:[#allocation10 + $0x30] sm:$0xff] }
 0x187   :  { %v4761_v56 = vld [vmem:[%s5240_s5 + $0x60] sm:$0xff] }
 0x189   :  { %2608 = vmatpush.bf16.msrb.mxu3 %v4288_v33  ;;  %2766 = vmatpush.bf16.msra.mxu1 %v4761_v56 }
 0x18a   :  { %v2047_v63 = vpop.f32.mrf.mxu2  ;;  %2755 = vmatpush.bf16.msra.mxu0 %v4751_v49 }
 0x18d   :  { %v2060_v0 = vpop.f32.mrf.mxu3  ;;  %2609 = vmatpush.bf16.msrb.mxu3 %v4280_v4  ;;  %2767 = vmatpush.bf16.msra.mxu1 %v4760_v57 }
 0x18e   :  { %2756 = vmatpush.bf16.msra.mxu0 %v4750_v53 }
 0x191   :  { %2610 = vmatpush.bf16.msrb.mxu3 %v4272_v41  ;;  %2768 = vmatpush.bf16.msra.mxu1 %v4759_v58  ;;  %v2789_v41 = vld [vmem:[#allocation10 + $0x38] sm:$0xff] }
 0x192   :  { %2757 = vmatpush.bf16.msra.mxu0 %v4749_v55  ;;  %2802 = vmatpush.msra.mxu2 %v2789_v41  ;;  %v4772_v58 = vld [vmem:[#allocation8 + $0x18] sm:$0xff] }
 0x194   :  { %2803 = vmatpush.msra.mxu2 %v2788_v42 }
 0x195   :  { %2769 = vmatpush.bf16.msra.mxu1 %v4758_v59  ;;  %v4771_v59 = vld [vmem:[#allocation8 + $0x10] sm:$0xff] }
 0x199   :  { %2770 = vmatpush.bf16.msra.mxu1 %v4757_v60  ;;  %v4770_v60 = vld [vmem:[#allocation8 + $0x8] sm:$0xff] }
 0x19b   :  { %v2071_v7 = vpop.f32.mrf.mxu0 }
 0x19c   :  { %v2084_v45 = vpop.f32.mrf.mxu1  ;;  %v2072_v8 = vadd.f32 %v2071_v7, %v2059_v31  ;;  %v2787_v31 = vld [vmem:[#allocation10 + $0x28] sm:$0xff]  ;;  %v2786_v7 = vld [vmem:[#allocation10 + $0x20] sm:$0xff] }
 0x19d   :  { %2804 = vmatpush.msra.mxu2 %v2787_v31 }
 0x19e   :  { %v2085_v9 = vadd.f32 %v2084_v45, %v2072_v8  ;;  %v2785_v45 = vld [vmem:[#allocation10 + $0x18] sm:$0xff]  ;;  %v2784_v8 = vld [vmem:[#allocation10 + $0x10] sm:$0xff] }
 0x19f   :  { %2805 = vmatpush.msra.mxu2 %v2786_v7 }
 0x1a1   :  { %2806 = vmatpush.msra.mxu2 %v2785_v45 }
 0x1a3   :  { %v2097_v10 = vpop.f32.mrf.mxu2  ;;  %v2073_v13 = vpop.f32.mrf.mxu0  ;;  %2807 = vmatpush.msra.mxu2 %v2784_v8 }
 0x1a4   :  { %v2098_v44 = vadd.f32 %v2097_v10, %v2085_v9  ;;  %v2110_v12 = vpop.f32.mrf.mxu3  ;;  %v2086_v14 = vpop.f32.mrf.mxu1  ;;  %v2783_v9 = vld [vmem:[#allocation10 + $0x8] sm:$0xff]  ;;  %v2782_v10 = vld [vmem:[#allocation10] sm:$0xff]  ;;  %v4792_v13 = vld [vmem:[%s5241_s6] ss:$0 sm:$0xff] }
 0x1a5   :  { %2808 = vmatpush.msra.mxu2 %v2783_v9 }
 0x1a6   :  { %v2111_v15 = vadd.f32 %v2110_v12, %v2098_v44 }
 0x1a7   :  { %2809 = vmatpush.msra.mxu2 %v2782_v10 }
 0x1a8   :  { %v2117_v16 = vmax.f32 %v2111_v15, 0.0 }
 0x1a9   :  { %2908 = vmatpush.msrb.mxu2 %v2789_v41 }
 0x1aa   :  { %v2121_v17 = vpack.c.bf16 %v2117_v16, %v2117_v16 }
 0x1ab   :  { %v2099_v18 = vpop.f32.mrf.mxu2  ;;  %2909 = vmatpush.msrb.mxu2 %v2788_v42 }
 0x1ac   :  { %v2112_v19 = vpop.f32.mrf.mxu3  ;;  %2559 = vmatmul.bf16.vlgmr.msra.gmra.mxu3 %v2121_v17 }
 0x1ad   :  { %2910 = vmatpush.msrb.mxu2 %v2787_v31 }
 0x1af   :  { %2911 = vmatpush.msrb.mxu2 %v2786_v7  ;;  %v4796_v7 = vld [vmem:[%s5243_s8 + $0x1] ss:$0 sm:$0xff] }
 0x1b1   :  { %2912 = vmatpush.msrb.mxu2 %v2785_v45 }
 0x1b3   :  { %2913 = vmatpush.msrb.mxu2 %v2784_v8  ;;  %v4797_v8 = vld [vmem:[%s5243_s8 + $0x2] ss:$0 sm:$0xff] }
 0x1b5   :  { %2914 = vmatpush.msrb.mxu2 %v2783_v9 }
 0x1b7   :  { %2915 = vmatpush.msrb.mxu2 %v2782_v10 }
 0x1bb   :  { %v2521_v21 = vpop.f32.mrf.mxu0 }
 0x1bc   :  { %v2522_v22 = vadd.f32 %v2521_v21, %v2188_v20  ;;  %v2534_v23 = vpop.f32.mrf.mxu1  ;;  %2611 = vmatmul.bf16.vlgmr.msrb.gmra.mxu3 %v2121_v17  ;;  %v4768_v20 = vld [vmem:[#allocation7 + $0x18] sm:$0xff]  ;;  %v4767_v21 = vld [vmem:[#allocation7 + $0x10] sm:$0xff] }
 0x1bd   :  { %2883 = vmatpush.bf16.msra.mxu3 %v4768_v20 }
 0x1be   :  { %v2535_v11 = vadd.f32 %v2534_v23, %v2522_v22  ;;  %v4766_v22 = vld [vmem:[#allocation7 + $0x8] sm:$0xff] }
 0x1c1   :  { %2884 = vmatpush.bf16.msra.mxu3 %v4767_v21 }
 0x1c3   :  { %v2523_v25 = vpop.f32.mrf.mxu0 }
 0x1c4   :  { %v2536_v26 = vpop.f32.mrf.mxu1  ;;  %v4765_v25 = vld [vmem:[#allocation7] sm:$0xff] }
 0x1c5   :  { %2885 = vmatpush.bf16.msra.mxu3 %v4766_v22 }
 0x1c9   :  { %2886 = vmatpush.bf16.msra.mxu3 %v4765_v25 }
 0x1cd   :  { %2992 = vmatpush.bf16.msrb.mxu3 %v4772_v58 }
 0x1d1   :  { %2993 = vmatpush.bf16.msrb.mxu3 %v4771_v59 }
 0x1d5   :  { %2994 = vmatpush.bf16.msrb.mxu3 %v4770_v60 }
 0x1db   :  { %v2573_v28 = vpop.f32.mrf.mxu0 }
 0x1dc   :  { %v2574_v37 = vadd.f32 %v2573_v28, %v2189_v27  ;;  %v2586_v30 = vpop.f32.mrf.mxu1 }
 0x1de   :  { %v2587_v24 = vadd.f32 %v2586_v30, %v2574_v37 }
 0x1e3   :  { %v2575_v36 = vpop.f32.mrf.mxu0 }
 0x1e4   :  { %v2588_v39 = vpop.f32.mrf.mxu1 }
 0x1ef   :  { %v2547_v46 = vpop.f32.mrf.mxu2 }
 0x1f0   :  { %v2548_v61 = vadd.f32 %v2547_v46, %v2535_v11 }
 0x1f7   :  { %v2549_v29 = vpop.f32.mrf.mxu2 }
 0x1ff   :  { %v2599_v51 = vpop.f32.mrf.mxu2 }
 0x200   :  { %v2600_v2 = vadd.f32 %v2599_v51, %v2587_v24  ;;  %v4795_v51 = vld [vmem:[%s5243_s8] ss:$0 sm:$0xff] }
 0x207   :  { %v2601_v52 = vpop.f32.mrf.mxu2 }
 0x22f   :  { %v2560_v62 = vpop.f32.mrf.mxu3 }
 0x230   :  { %v2561_v63 = vadd.f32 %v2560_v62, %v2548_v61 }
 0x232   :  { %v2616_v0 = vmax.f32 %v2561_v63, 0.0 }
 0x234   :  { %v2618_v33 = vpack.c.bf16 %v2616_v0, %v2616_v0  ;;  %v4769_v0 = vld [vmem:[#allocation8] sm:$0xff] }
 0x235   :  { %2995 = vmatpush.bf16.msrb.mxu3 %v4769_v0 }
 0x236   :  { %2758 = vmatmul.bf16.vlgmr.msra.gmra.mxu0 %v2618_v33 }
 0x237   :  { %v2562_v1 = vpop.f32.mrf.mxu3 }
 0x23f   :  { %v2612_v3 = vpop.f32.mrf.mxu3 }
 0x240   :  { %v2613_v4 = vadd.f32 %v2612_v3, %v2600_v2 }
 0x242   :  { %v2617_v5 = vmax.f32 %v2613_v4, 0.0 }
 0x244   :  { %v2619_v34 = vpack.c.bf16 %v2617_v5, %v2617_v5 }
 0x246   :  { %2771 = vmatmul.bf16.vlgmr.msra.gmra.mxu1 %v2619_v34 }
 0x247   :  { %v2614_v35 = vpop.f32.mrf.mxu3 }
 0x2b3   :  { %v2759_v44 = vpop.f32.mrf.mxu0 }
 0x2b4   :  { %v2760_v14 = vadd.f32 %v4792_v13, %v2759_v44  ;;  %v4969_v13 = vmov 6  }
 0x2b5   :  { %4791 = vset.pattern.permute.xlu0 %v4969_v13 }
 0x2bb   :  { %v2761_v12 = vpop.f32.mrf.mxu0 }
 0x2c3   :  { %v2772_v15 = vpop.f32.mrf.mxu1 }
 0x2c4   :  { %v2773_v16 = vadd.f32 %v2772_v15, %v2760_v14  ;;  %v4798_v14 = vld [vmem:[%s5245_s10] ss:$0 sm:$0xff] }
 0x2c6   :  { %v2776_v17 = vmul.f32 %v2773_v16, %v2773_v16 }
 0x2c8   :  { %v2778_v18 = vrot.slane %v2776_v17, 6 }
 0x2ca   :  { %v2781_v19 = vsel %vm2780_vm0, %v2773_v16, %v2778_v18 }
 0x2cb   :  { %v2774_v6 = vpop.f32.mrf.mxu1  ;;  %4393 = vmatmul.msk.f32.vlgmr.msra.gmra.mxu2 %vm2790_vm1, %v2781_v19  ;;  %v4970_v19 = vmov 12.0  }
 0x34e   :  { %v2811_v23 = vpop.f32.mrf.mxu2 }
 0x34f   :  { %v2814_v11 = vmul.f32 %v2811_v23, %v2811_v23  ;;  %v2819_v32 = vsub.f32 %v2773_v16, %v2811_v23 }
 0x351   :  { %v2816_v26 = vrot.slane %v2814_v11, 6 }
 0x353   :  { %v2818_v27 = vsub.f32 %v2811_v23, %v2816_v26 }
 0x355   :  { %v2820_v28 = vadd.f32 1e-05, %v2818_v27 }
 0x357   :  { %4799 = vrsqrt.f32 %v2820_v28  ;;  %vm2827_vm3 = vweird.f32 %v2820_v28 }
 0x35d   :  { %v4800_v37 = vpop.eup %4799 }
 0x35e   :  { %v2822_v30 = vmul.f32 %v4800_v37, %v2820_v28  ;;  %vm2828_vm2 = vweird.f32 %v4800_v37 }
 0x35f   :  { %vm2829_vm4 = vmor %vm2827_vm3, %vm2828_vm2 }
 0x360   :  { %v2823_v24 = vmul.f32 %v4800_v37, %v2822_v30 }
 0x362   :  { %v2824_v36 = vmul.f32 0.5, %v2823_v24 }
 0x364   :  { %v2825_v39 = vsub.f32 1.5, %v2824_v36 }
 0x366   :  { %v2826_v43 = vmul.f32 %v4800_v37, %v2825_v39 }
 0x368   :  { %v2830_v40 = vsel %vm2829_vm4, %v4800_v37, %v2826_v43 }
 0x369   :  { %v2832_v50 = vrot.slane %v2830_v40, 2 }
 0x36b   :  { %v2834_v46 = vmul.f32 %v2832_v50, %v2819_v32 }
 0x36d   :  { %v2837_v48 = vmul.f32 %v4793_v38, %v2834_v46 }
 0x36f   :  { %v2840_v29 = vadd.f32 %v4794_v47, %v2837_v48 }
 0x371   :  { %v2841_v49 = vpack.c.bf16 %v2840_v29, %v2840_v29 }
 0x373   :  { %4410 = vmatmul.msk.bf16.vlgmr.msra.gmra.mxu3 %vm2790_vm1, %v2841_v49 }
 0x3f6   :  { %v2888_v52 = vpop.f32.mrf.mxu3 }
 0x3f7   :  { %v2889_v53 = vadd.f32 %v4795_v51, %v2888_v52 }
 0x3f9   :  { %v2892_v54 = vmul.f32 %v2889_v53, %v2889_v53 }
 0x3fb   :  { %v2894_v55 = vrot.slane %v2892_v54, 6 }
 0x3fd   :  { %v2896_v56 = vsel %vm2780_vm0, %v2889_v53, %v2894_v55 }
 0x3fe   :  { %v2890_v57 = vpop.f32.mrf.mxu3  ;;  %4411 = vmatmul.msk.f32.vlgmr.msrb.gmra.mxu2 %vm2790_vm1, %v2896_v56 }
 0x481   :  { %v2917_v61 = vpop.f32.mrf.mxu2 }
 0x482   :  { %v2920_v62 = vmul.f32 %v2917_v61, %v2917_v61  ;;  %v2925_v42 = vsub.f32 %v2889_v53, %v2917_v61 }
 0x484   :  { %v2922_v63 = vrot.slane %v2920_v62, 6 }
 0x486   :  { %v2924_v33 = vsub.f32 %v2917_v61, %v2922_v63 }
 0x488   :  { %v2926_v1 = vadd.f32 1e-05, %v2924_v33 }
 0x48a   :  { %4801 = vrsqrt.f32 %v2926_v1  ;;  %vm2933_vm6 = vweird.f32 %v2926_v1 }
 0x48b   :  { %4803 = vrcp.f32 %v4970_v19 }
 0x490   :  { %v4802_v2 = vpop.eup %4801 }
 0x491   :  { %v2928_v3 = vmul.f32 %v4802_v2, %v2926_v1  ;;  %vm2934_vm5 = vweird.f32 %v4802_v2  ;;  %v4804_v6 = vpop.eup %4803 }
 0x492   :  { %vm2935_vm7 = vmor %vm2933_vm6, %vm2934_vm5  ;;  %v3019_v20 = vmul.f32 12.0, %v4804_v6  ;;  %vm3023_vm9 = vweird.f32 %v4804_v6 }
 0x493   :  { %v2929_v4 = vmul.f32 %v4802_v2, %v2928_v3 }
 0x494   :  { %v3020_v21 = vsub.f32 1.0, %v3019_v20 }
 0x495   :  { %v2930_v5 = vmul.f32 0.5, %v2929_v4 }
 0x496   :  { %v3021_v25 = vmul.f32 %v4804_v6, %v3020_v21 }
 0x497   :  { %v2931_v34 = vsub.f32 1.5, %v2930_v5 }
 0x498   :  { %v3022_v28 = vadd.f32 %v4804_v6, %v3021_v25 }
 0x499   :  { %v2932_v35 = vmul.f32 %v4802_v2, %v2931_v34 }
 0x49a   :  { %v3024_v24 = vsel %vm3023_vm9, %v4804_v6, %v3022_v28 }
 0x49b   :  { %v2936_v41 = vsel %vm2935_vm7, %v4802_v2, %v2932_v35 }
 0x49c   :  { %v2938_v31 = vrot.slane %v2936_v41, 2 }
 0x49e   :  { %v2940_v45 = vmul.f32 %v2938_v31, %v2925_v42 }
 0x4a0   :  { %v2943_v9 = vmul.f32 %v4796_v7, %v2940_v45 }
 0x4a2   :  { %v2946_v10 = vadd.f32 %v4797_v8, %v2943_v9 }
 0x4a4   :  { %v2947_v44 = vmax.f32 %v2946_v10, 0.0 }
 0x4a6   :  { %v2948_v12 = vpack.c.bf16 %v2947_v44, %v2947_v44 }
 0x4a8   :  { %4428 = vmatmul.msk.bf16.vlgmr.msrb.gmra.mxu3 %vm2790_vm1, %v2948_v12 }
 0x52b   :  { %v2997_v15 = vpop.f32.mrf.mxu3 }
 0x52c   :  { %v2998_v16 = vadd.f32 %v4798_v14, %v2997_v15 }
 0x52e   :  { %v3008_v17 = vsel %vm3007_vm8, %v2998_v16, 0.0 }
 0x52f   :  { %3009 = vadd.xlane.f32.xlu0 %v3008_v17 }
 0x533   :  { %v2999_v18 = vpop.f32.mrf.mxu3 }
 0x543   :  { %3003 = vperm.xlu0 %4791, %v2998_v16  }
 0x5a2   :  { %v3010_v22 = vpop.xlane.xlu0 %3009 }
 0x5a3   :  { %v3011_v23 = vrot.slane %v3010_v22, 4 }
 0x5a5   :  { %v3012_v11 = vadd.f32 %v3011_v23, %v3010_v22 }
 0x5a7   :  { %v3013_v26 = vrot.slane %v3012_v11, 2 }
 0x5a9   :  { %v3014_v27 = vadd.f32 %v3013_v26, %v3012_v11 }
 0x5ab   :  { %v3015_v37 = vrot.slane %v3014_v27, 1 }
 0x5ad   :  { %v3016_v30 = vadd.f32 %v3015_v37, %v3014_v27 }
 0x5af   :  { %4773 = vpush %v3016_v30 }
 0x5b0   :  { %4775 = vpush %v3024_v24 }
 0x5b5   :  { %v3004_v36 = vpop.permute.xlu0 %3003 }
 0x5b6   :  { %v3006_v39 = vadd.f32 %v3004_v36, %v2998_v16 }
 0x5e0   :  { %s4774_s8 = spop %4773 }
 0x5e1   :  { %s4776_s10 = spop %4775 }
 0x5e2   :  { %s3026_s0 = smul.f32 %s4776_s10, %s4774_s8 }
 0x5e4   :  { %v3027_v43 = vstv %s3026_s0 }
 0x5e5   :  { %v3028_v40 = vsub.f32 %v3006_v39, %v3027_v43 }
 0x5e7   :  { %3029 = vst.msk [vmem:[#allocation11] sm:$0x3] %vm3007_vm8, %v3028_v40 }
 0x5e8   :  { %3040 = dma.vmem_to_hbm [thread:$0]  %s3036_s27, 32, %s3038_s16, [#allocation4]  }
 0x5e9   :  { %4956 = dma.done.wait [#allocation4], 32  }
 0x5ea   :  { %4957 = vsyncadd [#allocation4], 4294967264 }
 0x5eb   :  { %3045 = vsyncpa [#allocation3], 1 }
 0x5ec   :  { %3046 = vsyncpa [#allocation6], 1 }
 0x5ed   :  { %3047 = vsyncpa [#allocation9], 1 }
 0x5ee   :  { %3048 = vsyncpa [#allocation4], 1 }

</bundles_post_ra>
